<compile_context>
chip_gen: v6e
topology: v6e:2x2x1
jax: 0.10.0
libtpu: 0.0.40
codegen_flags: <defaults>
</compile_context>

<pallas_src>
import functools
import math

import jax
import jax.numpy as jnp
from jax.experimental import pallas as pl
from jax.experimental.pallas import tpu as pltpu


def _round_up(x, m):
    return ((x + m - 1) // m) * m


def _gelu_tanh(x):
    # tanh-form GELU: tanh runs on the EUP so VALU slots stay free.
    c = math.sqrt(2.0 / math.pi)
    return 0.5 * x * (1.0 + jnp.tanh(c * (x + 0.044715 * x * x * x)))


# ----------------------------------------------------------------------------
# Kernel: full FNet stack for a tile of Bt batch elements.
# grid = (nb, L); layer axis last ('arbitrary'), activation carried in h_ref.
# ----------------------------------------------------------------------------
def fnet_stack_kernel(emb_ref, mask_ref, pos_ref, cdsd_ref, cs_ref, ss_ref,
                      vec_ref, w1_ref, w2_ref, mixer_ref,
                      out_ref, h_ref, *, inv_d, bt, sp, dp, hp):
    eps = 1e-5
    l = pl.program_id(1)
    n_layers = pl.num_programs(1)

    # ---- layer-0 prologue: (emb + pos) * mask  ->  VMEM-resident activation.
    @pl.when(l == 0)
    def _():
        pos = pos_ref[...]                                      # (Sp, Dp)
        for b in range(bt):                                     # static unroll
            r = b * sp
            h_ref[r:r + sp, :] = ((emb_ref[r:r + sp, :] + pos)
                                  * mask_ref[r:r + sp, :])

    x = h_ref[...]                                              # (Bt*Sp, Dp) fp32
    m = mask_ref[...]                                           # (Bt*Sp, 1)  fp32

    # ---- per-layer params (all layers resident in VMEM; pick layer l).
    vec = vec_ref[l]                                            # (8, Pmax)
    g1, be1 = vec[0:1, :dp], vec[1:2, :dp]
    g2, be2 = vec[2:3, :dp], vec[3:4, :dp]
    b1, b2 = vec[4:5, :hp], vec[5:6, :dp]
    w1 = w1_ref[l]                                              # (Dp, Hp) bf16
    w2 = w2_ref[l]                                              # (Hp, Dp) bf16

    # ---- Fourier mixing: Re(FFT2(x)) = C_S @ (x C_D) - S_S @ (x S_D) --------
    xcs = jnp.dot(x.astype(jnp.bfloat16), cdsd_ref[...],
                  preferred_element_type=jnp.float32)           # (Bt*Sp, 2Dp)
    cs = cs_ref[...]
    ss = ss_ref[...]
    parts = []
    for b in range(bt):                                         # per-seq DFT
        r = b * sp
        xc_b = xcs[r:r + sp, :dp].astype(jnp.bfloat16)
        xs_b = xcs[r:r + sp, dp:].astype(jnp.bfloat16)
        parts.append(jnp.dot(cs, xc_b, preferred_element_type=jnp.float32)
                     - jnp.dot(ss, xs_b, preferred_element_type=jnp.float32))
    dft = parts[0] if bt == 1 else jnp.concatenate(parts, axis=0)
    dft = dft * m

    # ---- norm1(dft + x): sums over the REAL D columns (padding is zero) -----
    h = dft + x
    mu = jnp.sum(h, axis=-1, keepdims=True) * inv_d
    var = jnp.sum(h * h, axis=-1, keepdims=True) * inv_d - mu * mu
    hn = (h - mu) * jax.lax.rsqrt(var + eps) * g1 + be1

    # ---- feed-forward: Linear -> GELU -> Linear (dropout = identity, eval) --
    z = jnp.dot(hn.astype(jnp.bfloat16), w1,
                preferred_element_type=jnp.float32) + b1
    z = _gelu_tanh(z)
    ff = jnp.dot(z.astype(jnp.bfloat16), w2,
                 preferred_element_type=jnp.float32) + b2

    # ---- norm2(ff + hn) ------------------------------------------------------
    o = ff + hn
    mu2 = jnp.sum(o, axis=-1, keepdims=True) * inv_d
    var2 = jnp.sum(o * o, axis=-1, keepdims=True) * inv_d - mu2 * mu2
    on = (o - mu2) * jax.lax.rsqrt(var2 + eps) * g2 + be2

    @pl.when(l < n_layers - 1)          # skip redundant store on last layer
    def _():
        h_ref[...] = on

    @pl.when(l == n_layers - 1)         # fused mixer blend epilogue
    def _():
        mix = mixer_ref[...]                                    # (1, 1) broadcast
        out_ref[...] = mix * emb_ref[...] + (1.0 - mix) * on


# ----------------------------------------------------------------------------
# pallas_call wrapper
# ----------------------------------------------------------------------------
def _choose_batch_tile(B, Sp, Dp):
    """Batch elements per block: enough folded rows (Bt*Sp) to fill the MXU
    (target >= 256) while keeping each fp32 activation block <= ~4 MiB."""
    bt = min(B, max(1, 256 // Sp))
    vmem_cap = max(1, (4 << 20) // (Sp * Dp * 4))
    return max(1, min(bt, vmem_cap))


def fnet_stack_pallas(emb2, mask2, pos, cdsd, cs, ss, packed, d_real, bt, sp):
    rows_total, Dp = emb2.shape
    L, _, Hp = packed["w1"].shape
    P = packed["vecs"].shape[-1]
    rows = bt * sp
    nb = rows_total // rows

    # --- explicit VMEM budget (layout-padded, double-buffered estimate) ------
    def vb(shape, dtype, bufs=2):
        s = list(shape)
        if len(s) >= 2:
            s[-1] = _round_up(s[-1], 128)
            s[-2] = _round_up(s[-2], 8)
        n = 1
        for d in s:
            n *= int(d)
        return bufs * n * jnp.dtype(dtype).itemsize

    est = (vb((rows, Dp), jnp.float32)            # emb block
           + vb((rows, 1), jnp.float32)           # mask block
           + vb((sp, Dp), jnp.float32)            # pos table
           + vb((Dp, 2 * Dp), jnp.bfloat16)       # [C_D | S_D]
           + 2 * vb((sp, sp), jnp.bfloat16)       # C_S, S_S
           + vb((L, 8, P), jnp.float32)           # packed per-layer vectors
           + vb((L, Dp, Hp), jnp.bfloat16)        # dense_1 W (all layers)
           + vb((L, Hp, Dp), jnp.bfloat16)        # dense_2 W (all layers)
           + vb((1, 1), jnp.float32)              # mixer
           + vb((rows, Dp), jnp.float32)          # out block
           + vb((rows, Dp), jnp.float32, bufs=1))  # h scratch
    try:
        cap = int(0.80 * pltpu.get_tpu_info().vmem_capacity_bytes)
    except Exception:
        cap = 48 << 20                            # safe on v7x (64 MiB/TC)
    vmem_limit = int(min(max(int(1.25 * est), 32 << 20), cap))

    kernel = functools.partial(fnet_stack_kernel, inv_d=1.0 / float(d_real),
                               bt=bt, sp=sp, dp=Dp, hp=Hp)

    return pl.pallas_call(
        kernel,
        out_shape=jax.ShapeDtypeStruct((rows_total, Dp), jnp.float32),
        grid_spec=pltpu.PrefetchScalarGridSpec(
            num_scalar_prefetch=0,
            grid=(nb, L),
            in_specs=[
                pl.BlockSpec((rows, Dp), lambda bi, l: (bi, 0)),     # emb (folded)
                pl.BlockSpec((rows, 1), lambda bi, l: (bi, 0)),      # mask (folded)
                pl.BlockSpec((sp, Dp), lambda bi, l: (0, 0)),        # pos table
                pl.BlockSpec((Dp, 2 * Dp), lambda bi, l: (0, 0)),    # [C_D | S_D] bf16
                pl.BlockSpec((sp, sp), lambda bi, l: (0, 0)),        # C_S bf16
                pl.BlockSpec((sp, sp), lambda bi, l: (0, 0)),        # S_S bf16
                pl.BlockSpec((L, 8, P), lambda bi, l: (0, 0, 0)),    # packed vectors
                pl.BlockSpec((L, Dp, Hp), lambda bi, l: (0, 0, 0)),  # dense_1 W (all L)
                pl.BlockSpec((L, Hp, Dp), lambda bi, l: (0, 0, 0)),  # dense_2 W (all L)
                pl.BlockSpec((1, 1), lambda bi, l: (0, 0)),          # mixer
            ],
            out_specs=pl.BlockSpec((rows, Dp), lambda bi, l: (bi, 0)),
            scratch_shapes=[pltpu.VMEM((rows, Dp), jnp.float32)],
        ),
        compiler_params=pltpu.CompilerParams(
            dimension_semantics=("parallel", "arbitrary"),
            vmem_limit_bytes=vmem_limit),
    )(emb2, mask2, pos, cdsd, cs, ss,
      packed["vecs"], packed["w1"], packed["w2"], packed["mixer"])


# ----------------------------------------------------------------------------
# Hoisted constants (DFT matrices, positional tables) — built ONCE at setup.
# ----------------------------------------------------------------------------
def dft_real_matrices(n):
    k = jnp.arange(n, dtype=jnp.float32)
    ang = (2.0 * math.pi / n) * (k[:, None] * k[None, :])
    return jnp.cos(ang), jnp.sin(ang)                 # both symmetric


def positional_table(timesteps, hidden, min_timescale=1.0, max_timescale=1.0e4):
    # Same table as allennlp.nn.util.add_positional_features.
    ts = jnp.arange(timesteps, dtype=jnp.float32)
    num_ts = hidden // 2
    tsr = jnp.arange(num_ts, dtype=jnp.float32)
    log_inc = math.log(float(max_timescale) / float(min_timescale)) / float(max(num_ts - 1, 1))
    inv = min_timescale * jnp.exp(tsr * -log_inc)
    scaled = ts[:, None] * inv[None, :]
    sinus = jnp.concatenate([jnp.sin(scaled), jnp.cos(scaled)], axis=1)
    if hidden % 2 != 0:
        sinus = jnp.concatenate([sinus, jnp.zeros((timesteps, 1), jnp.float32)], axis=1)
    return sinus                                       # (S, hidden)


def make_constants(dim, seq_q, seq_d):
    Dp = _round_up(dim, 128)
    c_h, s_h = dft_real_matrices(dim)
    c_h = jnp.pad(c_h, ((0, Dp - dim), (0, Dp - dim)))
    s_h = jnp.pad(s_h, ((0, Dp - dim), (0, Dp - dim)))
    cdsd = jnp.concatenate([c_h, s_h], axis=1).astype(jnp.bfloat16)     # (Dp, 2Dp)

    def seq_consts(s):
        sp = _round_up(s, 8)
        c_s, s_s = dft_real_matrices(s)
        c_s = jnp.pad(c_s, ((0, sp - s), (0, sp - s))).astype(jnp.bfloat16)
        s_s = jnp.pad(s_s, ((0, sp - s), (0, sp - s))).astype(jnp.bfloat16)
        pos = jnp.pad(positional_table(s, dim), ((0, sp - s), (0, Dp - dim)))
        return c_s, s_s, pos

    cs_q, ss_q, pos_q = seq_consts(seq_q)
    cs_d, ss_d, pos_d = seq_consts(seq_d)
    return dict(cdsd=cdsd, cs_q=cs_q, ss_q=ss_q, pos_q=pos_q,
                cs_d=cs_d, ss_d=ss_d, pos_d=pos_d)


# ----------------------------------------------------------------------------
# Parameters (matching the PyTorch module) + packing for the kernel.
# ----------------------------------------------------------------------------
def init_params(n_layers, dim, key):
    L, D, H = n_layers, dim, 2 * dim                   # expansionFactor = 2
    k1, k2, k3, k4 = jax.random.split(key, 4)
    return dict(
        g1=jnp.ones((L, 1, D), jnp.float32),
        be1=jnp.zeros((L, 1, D), jnp.float32),
        g2=jnp.ones((L, 1, D), jnp.float32),
        be2=jnp.zeros((L, 1, D), jnp.float32),
        w1=jax.random.normal(k1, (L, D, H), jnp.float32) / math.sqrt(D),
        b1=jax.random.normal(k2, (L, 1, H), jnp.float32) * 0.01,
        w2=jax.random.normal(k3, (L, H, D), jnp.float32) / math.sqrt(H),
        b2=jax.random.normal(k4, (L, 1, D), jnp.float32) * 0.01,
        mixer=jnp.full((1, 1, 1), 0.5, jnp.float32),   # nn.Parameter([1,1,1]=0.5)
    )


def pack_params(params):
    """Zero-pad hidden dims to multiples of 128; bf16 matmul weights; pack the
    six tiny per-layer vectors into one (L, 8, Pmax) array."""
    L, D, H = params["w1"].shape
    Dp, Hp = _round_up(D, 128), _round_up(H, 128)
    P = max(Dp, Hp)

    def vec_row(v):                                    # (L,1,w) -> (L,1,P)
        return jnp.pad(v, ((0, 0), (0, 0), (0, P - v.shape[-1])))

    vecs = jnp.concatenate(
        [vec_row(params["g1"]), vec_row(params["be1"]),
         vec_row(params["g2"]), vec_row(params["be2"]),
         vec_row(params["b1"]), vec_row(params["b2"]),
         jnp.zeros((L, 2, P), jnp.float32)], axis=1)   # (L, 8, P)

    return dict(
        vecs=vecs,
        w1=jnp.pad(params["w1"], ((0, 0), (0, Dp - D), (0, Hp - H))).astype(jnp.bfloat16),
        w2=jnp.pad(params["w2"], ((0, 0), (0, Hp - H), (0, Dp - D))).astype(jnp.bfloat16),
        mixer=params["mixer"].reshape(1, 1),
    )


# ----------------------------------------------------------------------------
# Forward pass of ContextualizationLayer.
# ----------------------------------------------------------------------------
def contextualization_forward(packed, consts, q_emb, d_emb, q_mask, d_mask):
    D = q_emb.shape[-1]
    Dp = consts["cdsd"].shape[0]

    def run(emb, mask, cs, ss, pos):
        B, S, _ = emb.shape
        Sp = pos.shape[0]
        bt = _choose_batch_tile(B, Sp, Dp)
        nb = -(-B // bt)
        Bp = nb * bt
        emb_p = jnp.pad(emb, ((0, Bp - B), (0, Sp - S), (0, Dp - D)))
        mask_p = jnp.pad(mask.astype(jnp.float32), ((0, Bp - B), (0, Sp - S)))
        emb2 = emb_p.reshape(Bp * Sp, Dp)              # folded, lane-dense
        mask2 = mask_p.reshape(Bp * Sp, 1)
        y = fnet_stack_pallas(emb2, mask2, pos, consts["cdsd"], cs, ss,
                              packed, D, bt, Sp)
        return y.reshape(Bp, Sp, Dp)[:B, :S, :D]       # already mixer-blended

    q_out = run(q_emb, q_mask, consts["cs_q"], consts["ss_q"], consts["pos_q"])
    d_out = run(d_emb, d_mask, consts["cs_d"], consts["ss_d"], consts["pos_d"])
    return q_out, d_out


if __name__ == "__main__":
    key = jax.random.PRNGKey(0)
    B, Sq, Sd, D = 2, 8, 16, 32
    n_layers = 2

    kq, kd, kp = jax.random.split(key, 3)
    query_embeddings = jax.random.normal(kq, (B, Sq, D), jnp.float32)
    document_embeddings = jax.random.normal(kd, (B, Sd, D), jnp.float32)
    q_len = jnp.array([Sq, Sq - 2])
    d_len = jnp.array([Sd, Sd - 5])
    query_mask = jnp.arange(Sq)[None, :] < q_len[:, None]        # (B, Sq) bool
    document_mask = jnp.arange(Sd)[None, :] < d_len[:, None]     # (B, Sd) bool

    params = init_params(n_layers, D, kp)
    packed = pack_params(params)
    consts = make_constants(D, Sq, Sd)

    fwd = jax.jit(contextualization_forward)
    q_out, d_out = fwd(packed, consts, query_embeddings, document_embeddings,
                       query_mask, document_mask)
    jax.block_until_ready((q_out, d_out))

    assert q_out.shape == (B, Sq, D) and d_out.shape == (B, Sd, D)
    assert bool(jnp.all(jnp.isfinite(q_out))) and bool(jnp.all(jnp.isfinite(d_out)))
    print("KERNEL_OK")
</pallas_src>

<mosaic_0001>
module attributes {stable_mosaic.version = 11 : i64} {
  func.func @fnet_stack_kernel(%arg0: i32, %arg1: i32, %arg2: memref<16x128xf32, #tpu.memory_space<vmem>>, %arg3: memref<16x1xf32, #tpu.memory_space<vmem>>, %arg4: memref<8x128xf32, #tpu.memory_space<vmem>>, %arg5: memref<128x256xbf16, #tpu.memory_space<vmem>>, %arg6: memref<8x8xbf16, #tpu.memory_space<vmem>>, %arg7: memref<8x8xbf16, #tpu.memory_space<vmem>>, %arg8: memref<2x8x128xf32, #tpu.memory_space<vmem>>, %arg9: memref<2x128x128xbf16, #tpu.memory_space<vmem>>, %arg10: memref<2x128x128xbf16, #tpu.memory_space<vmem>>, %arg11: memref<1x1xf32, #tpu.memory_space<vmem>>, %arg12: memref<16x128xf32, #tpu.memory_space<vmem>>, %arg13: memref<16x128xf32, #tpu.memory_space<vmem>>) attributes {dimension_semantics = [#tpu.dimension_semantics<parallel>, #tpu.dimension_semantics<arbitrary>], iteration_bounds = array<i64: 1, 2>, scalar_prefetch = 0 : i64, scratch_operands = 1 : i64, tpu.core_type = #tpu.core_type<tc>, window_params = [{transform_indices = @transform_0, window_bounds = array<i64: 16, 128>}, {transform_indices = @transform_1, window_bounds = array<i64: 16, 1>}, {pipeline_mode = #tpu.pipeline_mode<synchronous>, transform_indices = @transform_2, window_bounds = array<i64: 8, 128>}, {pipeline_mode = #tpu.pipeline_mode<synchronous>, transform_indices = @transform_3, window_bounds = array<i64: 128, 256>}, {pipeline_mode = #tpu.pipeline_mode<synchronous>, transform_indices = @transform_4, window_bounds = array<i64: 8, 8>}, {pipeline_mode = #tpu.pipeline_mode<synchronous>, transform_indices = @transform_5, window_bounds = array<i64: 8, 8>}, {pipeline_mode = #tpu.pipeline_mode<synchronous>, transform_indices = @transform_6, window_bounds = array<i64: 2, 8, 128>}, {pipeline_mode = #tpu.pipeline_mode<synchronous>, transform_indices = @transform_7, window_bounds = array<i64: 2, 128, 128>}, {pipeline_mode = #tpu.pipeline_mode<synchronous>, transform_indices = @transform_8, window_bounds = array<i64: 2, 128, 128>}, {pipeline_mode = #tpu.pipeline_mode<synchronous>, transform_indices = @transform_9, window_bounds = array<i64: 1, 1>}, {transform_indices = @transform_10, window_bounds = array<i64: 16, 128>}]} {
    %c0_i32 = arith.constant 0 : i32
    %0 = arith.cmpi eq, %arg1, %c0_i32 : i32
    %1 = arith.extui %0 : i1 to i32
    %c0_i32_0 = arith.constant 0 : i32
    %2 = arith.cmpi ne, %1, %c0_i32_0 : i32
    scf.if %2 {
      %c0_39 = arith.constant 0 : index
      %c0_40 = arith.constant 0 : index
      %115 = vector.load %arg4[%c0_39, %c0_40] : memref<8x128xf32, #tpu.memory_space<vmem>>, vector<8x128xf32>
      %c0_41 = arith.constant 0 : index
      %c0_42 = arith.constant 0 : index
      %116 = vector.load %arg2[%c0_41, %c0_42] : memref<16x128xf32, #tpu.memory_space<vmem>>, vector<8x128xf32>
      %117 = arith.addf %116, %115 : vector<8x128xf32>
      %c0_43 = arith.constant 0 : index
      %c0_44 = arith.constant 0 : index
      %118 = vector.load %arg3[%c0_43, %c0_44] : memref<16x1xf32, #tpu.memory_space<vmem>>, vector<8x1xf32>
      %119 = vector.broadcast %118 : vector<8x1xf32> to vector<8x128xf32>
      %120 = arith.mulf %117, %119 : vector<8x128xf32>
      %c0_45 = arith.constant 0 : index
      %c0_46 = arith.constant 0 : index
      %121 = vector.load %arg13[%c0_45, %c0_46] : memref<16x128xf32, #tpu.memory_space<vmem>>, vector<8x128xf32>
      tpu.vector_store %arg13[%c0_45, %c0_46], %120 {strides = array<i32>} : memref<16x128xf32, #tpu.memory_space<vmem>>, vector<8x128xf32>,
      %c8 = arith.constant 8 : index
      %c0_47 = arith.constant 0 : index
      %122 = vector.load %arg2[%c8, %c0_47] : memref<16x128xf32, #tpu.memory_space<vmem>>, vector<8x128xf32>
      %123 = arith.addf %122, %115 : vector<8x128xf32>
      %c8_48 = arith.constant 8 : index
      %c0_49 = arith.constant 0 : index
      %124 = vector.load %arg3[%c8_48, %c0_49] : memref<16x1xf32, #tpu.memory_space<vmem>>, vector<8x1xf32>
      %125 = vector.broadcast %124 : vector<8x1xf32> to vector<8x128xf32>
      %126 = arith.mulf %123, %125 : vector<8x128xf32>
      %c8_50 = arith.constant 8 : index
      %c0_51 = arith.constant 0 : index
      %127 = vector.load %arg13[%c8_50, %c0_51] : memref<16x128xf32, #tpu.memory_space<vmem>>, vector<8x128xf32>
      tpu.vector_store %arg13[%c8_50, %c0_51], %126 {strides = array<i32>} : memref<16x128xf32, #tpu.memory_space<vmem>>, vector<8x128xf32>,
    } else {
    }
    %c0 = arith.constant 0 : index
    %c0_1 = arith.constant 0 : index
    %3 = vector.load %arg13[%c0, %c0_1] : memref<16x128xf32, #tpu.memory_space<vmem>>, vector<16x128xf32>
    %c0_2 = arith.constant 0 : index
    %c0_3 = arith.constant 0 : index
    %4 = vector.load %arg3[%c0_2, %c0_3] : memref<16x1xf32, #tpu.memory_space<vmem>>, vector<16x1xf32>
    %5 = arith.index_cast %arg1 : i32 to index
    %c0_4 = arith.constant 0 : index
    %c0_5 = arith.constant 0 : index
    %6 = vector.load %arg8[%5, %c0_4, %c0_5] : memref<2x8x128xf32, #tpu.memory_space<vmem>>, vector<1x8x128xf32>
    %7 = vector.shape_cast %6 : vector<1x8x128xf32> to vector<8x128xf32>
    %8 = vector.extract_strided_slice %7 {offsets = [0, 0], sizes = [1, 128], strides = [1, 1]} : vector<8x128xf32> to vector<1x128xf32>
    %9 = vector.extract_strided_slice %7 {offsets = [1, 0], sizes = [1, 128], strides = [1, 1]} : vector<8x128xf32> to vector<1x128xf32>
    %10 = vector.extract_strided_slice %7 {offsets = [2, 0], sizes = [1, 128], strides = [1, 1]} : vector<8x128xf32> to vector<1x128xf32>
    %11 = vector.extract_strided_slice %7 {offsets = [3, 0], sizes = [1, 128], strides = [1, 1]} : vector<8x128xf32> to vector<1x128xf32>
    %12 = vector.extract_strided_slice %7 {offsets = [4, 0], sizes = [1, 128], strides = [1, 1]} : vector<8x128xf32> to vector<1x128xf32>
    %13 = vector.extract_strided_slice %7 {offsets = [5, 0], sizes = [1, 128], strides = [1, 1]} : vector<8x128xf32> to vector<1x128xf32>
    %14 = arith.index_cast %arg1 : i32 to index
    %c0_6 = arith.constant 0 : index
    %c0_7 = arith.constant 0 : index
    %15 = vector.load %arg9[%14, %c0_6, %c0_7] : memref<2x128x128xbf16, #tpu.memory_space<vmem>>, vector<1x128x128xbf16>
    %16 = vector.shape_cast %15 : vector<1x128x128xbf16> to vector<128x128xbf16>
    %17 = arith.index_cast %arg1 : i32 to index
    %c0_8 = arith.constant 0 : index
    %c0_9 = arith.constant 0 : index
    %18 = vector.load %arg10[%17, %c0_8, %c0_9] : memref<2x128x128xbf16, #tpu.memory_space<vmem>>, vector<1x128x128xbf16>
    %19 = vector.shape_cast %18 : vector<1x128x128xbf16> to vector<128x128xbf16>
    %20 = arith.truncf %3 : vector<16x128xf32> to vector<16x128xbf16>
    %c0_10 = arith.constant 0 : index
    %c0_11 = arith.constant 0 : index
    %21 = vector.load %arg5[%c0_10, %c0_11] : memref<128x256xbf16, #tpu.memory_space<vmem>>, vector<128x256xbf16>
    %cst = arith.constant dense<0.000000e+00> : vector<16x256xf32>
    %22 = tpu.matmul %20, %21, %cst {dimension_numbers = #tpu.dot_dimension_numbers<[1], [0], [0], [1], [0, 0, 1, 1], [], []>} : vector<16x128xbf16>, vector<128x256xbf16>, vector<16x256xf32> -> vector<16x256xf32>
    %c0_12 = arith.constant 0 : index
    %c0_13 = arith.constant 0 : index
    %23 = vector.load %arg6[%c0_12, %c0_13] : memref<8x8xbf16, #tpu.memory_space<vmem>>, vector<8x8xbf16>
    %c0_14 = arith.constant 0 : index
    %c0_15 = arith.constant 0 : index
    %24 = vector.load %arg7[%c0_14, %c0_15] : memref<8x8xbf16, #tpu.memory_space<vmem>>, vector<8x8xbf16>
    %25 = vector.extract_strided_slice %22 {offsets = [0, 0], sizes = [8, 128], strides = [1, 1]} : vector<16x256xf32> to vector<8x128xf32>
    %26 = arith.truncf %25 : vector<8x128xf32> to vector<8x128xbf16>
    %27 = vector.extract_strided_slice %22 {offsets = [0, 128], sizes = [8, 128], strides = [1, 1]} : vector<16x256xf32> to vector<8x128xf32>
    %28 = arith.truncf %27 : vector<8x128xf32> to vector<8x128xbf16>
    %cst_16 = arith.constant dense<0.000000e+00> : vector<8x128xf32>
    %29 = tpu.matmul %23, %26, %cst_16 {dimension_numbers = #tpu.dot_dimension_numbers<[1], [0], [0], [1], [0, 0, 1, 1], [], []>} : vector<8x8xbf16>, vector<8x128xbf16>, vector<8x128xf32> -> vector<8x128xf32>
    %cst_17 = arith.constant dense<0.000000e+00> : vector<8x128xf32>
    %30 = tpu.matmul %24, %28, %cst_17 {dimension_numbers = #tpu.dot_dimension_numbers<[1], [0], [0], [1], [0, 0, 1, 1], [], []>} : vector<8x8xbf16>, vector<8x128xbf16>, vector<8x128xf32> -> vector<8x128xf32>
    %31 = arith.subf %29, %30 : vector<8x128xf32>
    %32 = vector.extract_strided_slice %22 {offsets = [8, 0], sizes = [8, 128], strides = [1, 1]} : vector<16x256xf32> to vector<8x128xf32>
    %33 = arith.truncf %32 : vector<8x128xf32> to vector<8x128xbf16>
    %34 = vector.extract_strided_slice %22 {offsets = [8, 128], sizes = [8, 128], strides = [1, 1]} : vector<16x256xf32> to vector<8x128xf32>
    %35 = arith.truncf %34 : vector<8x128xf32> to vector<8x128xbf16>
    %cst_18 = arith.constant dense<0.000000e+00> : vector<8x128xf32>
    %36 = tpu.matmul %23, %33, %cst_18 {dimension_numbers = #tpu.dot_dimension_numbers<[1], [0], [0], [1], [0, 0, 1, 1], [], []>} : vector<8x8xbf16>, vector<8x128xbf16>, vector<8x128xf32> -> vector<8x128xf32>
    %cst_19 = arith.constant dense<0.000000e+00> : vector<8x128xf32>
    %37 = tpu.matmul %24, %35, %cst_19 {dimension_numbers = #tpu.dot_dimension_numbers<[1], [0], [0], [1], [0, 0, 1, 1], [], []>} : vector<8x8xbf16>, vector<8x128xbf16>, vector<8x128xf32> -> vector<8x128xf32>
    %38 = arith.subf %36, %37 : vector<8x128xf32>
    %39 = tpu.concatenate %31, %38 in 0 : vector<8x128xf32>, vector<8x128xf32> -> vector<16x128xf32>
    %40 = vector.broadcast %4 : vector<16x1xf32> to vector<16x128xf32>
    %41 = arith.mulf %39, %40 : vector<16x128xf32>
    %42 = arith.addf %41, %3 : vector<16x128xf32>
    %cst_20 = arith.constant dense<0.000000e+00> : vector<16xf32>
    %43 = vector.multi_reduction <add>, %42, %cst_20 [1] : vector<16x128xf32> to vector<16xf32>
    %44 = vector.shape_cast %43 : vector<16xf32> to vector<16x1xf32>
    %cst_21 = arith.constant 3.125000e-02 : f32
    %45 = vector.broadcast %cst_21 : f32 to vector<16x1xf32>
    %46 = arith.mulf %44, %45 : vector<16x1xf32>
    %47 = arith.mulf %42, %42 : vector<16x128xf32>
    %cst_22 = arith.constant dense<0.000000e+00> : vector<16xf32>
    %48 = vector.multi_reduction <add>, %47, %cst_22 [1] : vector<16x128xf32> to vector<16xf32>
    %49 = vector.shape_cast %48 : vector<16xf32> to vector<16x1xf32>
    %cst_23 = arith.constant 3.125000e-02 : f32
    %50 = vector.broadcast %cst_23 : f32 to vector<16x1xf32>
    %51 = arith.mulf %49, %50 : vector<16x1xf32>
    %52 = arith.mulf %46, %46 : vector<16x1xf32>
    %53 = arith.subf %51, %52 : vector<16x1xf32>
    %54 = vector.broadcast %46 : vector<16x1xf32> to vector<16x128xf32>
    %55 = arith.subf %42, %54 : vector<16x128xf32>
    %cst_24 = arith.constant 9.99999974E-6 : f32
    %56 = vector.broadcast %cst_24 : f32 to vector<16x1xf32>
    %57 = arith.addf %53, %56 : vector<16x1xf32>
    %58 = math.rsqrt %57 : vector<16x1xf32>
    %59 = vector.broadcast %58 : vector<16x1xf32> to vector<16x128xf32>
    %60 = arith.mulf %55, %59 : vector<16x128xf32>
    %61 = vector.broadcast %8 : vector<1x128xf32> to vector<16x128xf32>
    %62 = arith.mulf %60, %61 : vector<16x128xf32>
    %63 = vector.broadcast %9 : vector<1x128xf32> to vector<16x128xf32>
    %64 = arith.addf %62, %63 : vector<16x128xf32>
    %65 = arith.truncf %64 : vector<16x128xf32> to vector<16x128xbf16>
    %cst_25 = arith.constant dense<0.000000e+00> : vector<16x128xf32>
    %66 = tpu.matmul %65, %16, %cst_25 {dimension_numbers = #tpu.dot_dimension_numbers<[1], [0], [0], [1], [0, 0, 1, 1], [], []>} : vector<16x128xbf16>, vector<128x128xbf16>, vector<16x128xf32> -> vector<16x128xf32>
    %67 = vector.broadcast %12 : vector<1x128xf32> to vector<16x128xf32>
    %68 = arith.addf %66, %67 : vector<16x128xf32>
    %cst_26 = arith.constant 5.000000e-01 : f32
    %69 = vector.broadcast %cst_26 : f32 to vector<16x128xf32>
    %70 = arith.mulf %69, %68 : vector<16x128xf32>
    %cst_27 = arith.constant 4.471500e-02 : f32
    %71 = vector.broadcast %cst_27 : f32 to vector<16x128xf32>
    %72 = arith.mulf %71, %68 : vector<16x128xf32>
    %73 = arith.mulf %72, %68 : vector<16x128xf32>
    %74 = arith.mulf %73, %68 : vector<16x128xf32>
    %75 = arith.addf %68, %74 : vector<16x128xf32>
    %cst_28 = arith.constant 0.797884583 : f32
    %76 = vector.broadcast %cst_28 : f32 to vector<16x128xf32>
    %77 = arith.mulf %76, %75 : vector<16x128xf32>
    %78 = math.tanh %77 : vector<16x128xf32>
    %cst_29 = arith.constant 1.000000e+00 : f32
    %79 = vector.broadcast %cst_29 : f32 to vector<16x128xf32>
    %80 = arith.addf %79, %78 : vector<16x128xf32>
    %81 = arith.mulf %70, %80 : vector<16x128xf32>
    %82 = arith.truncf %81 : vector<16x128xf32> to vector<16x128xbf16>
    %cst_30 = arith.constant dense<0.000000e+00> : vector<16x128xf32>
    %83 = tpu.matmul %82, %19, %cst_30 {dimension_numbers = #tpu.dot_dimension_numbers<[1], [0], [0], [1], [0, 0, 1, 1], [], []>} : vector<16x128xbf16>, vector<128x128xbf16>, vector<16x128xf32> -> vector<16x128xf32>
    %84 = vector.broadcast %13 : vector<1x128xf32> to vector<16x128xf32>
    %85 = arith.addf %83, %84 : vector<16x128xf32>
    %86 = arith.addf %85, %64 : vector<16x128xf32>
    %cst_31 = arith.constant dense<0.000000e+00> : vector<16xf32>
    %87 = vector.multi_reduction <add>, %86, %cst_31 [1] : vector<16x128xf32> to vector<16xf32>
    %88 = vector.shape_cast %87 : vector<16xf32> to vector<16x1xf32>
    %cst_32 = arith.constant 3.125000e-02 : f32
    %89 = vector.broadcast %cst_32 : f32 to vector<16x1xf32>
    %90 = arith.mulf %88, %89 : vector<16x1xf32>
    %91 = arith.mulf %86, %86 : vector<16x128xf32>
    %cst_33 = arith.constant dense<0.000000e+00> : vector<16xf32>
    %92 = vector.multi_reduction <add>, %91, %cst_33 [1] : vector<16x128xf32> to vector<16xf32>
    %93 = vector.shape_cast %92 : vector<16xf32> to vector<16x1xf32>
    %cst_34 = arith.constant 3.125000e-02 : f32
    %94 = vector.broadcast %cst_34 : f32 to vector<16x1xf32>
    %95 = arith.mulf %93, %94 : vector<16x1xf32>
    %96 = arith.mulf %90, %90 : vector<16x1xf32>
    %97 = arith.subf %95, %96 : vector<16x1xf32>
    %98 = vector.broadcast %90 : vector<16x1xf32> to vector<16x128xf32>
    %99 = arith.subf %86, %98 : vector<16x128xf32>
    %cst_35 = arith.constant 9.99999974E-6 : f32
    %100 = vector.broadcast %cst_35 : f32 to vector<16x1xf32>
    %101 = arith.addf %97, %100 : vector<16x1xf32>
    %102 = math.rsqrt %101 : vector<16x1xf32>
    %103 = vector.broadcast %102 : vector<16x1xf32> to vector<16x128xf32>
    %104 = arith.mulf %99, %103 : vector<16x128xf32>
    %105 = vector.broadcast %10 : vector<1x128xf32> to vector<16x128xf32>
    %106 = arith.mulf %104, %105 : vector<16x128xf32>
    %107 = vector.broadcast %11 : vector<1x128xf32> to vector<16x128xf32>
    %108 = arith.addf %106, %107 : vector<16x128xf32>
    %c1_i32 = arith.constant 1 : i32
    %109 = arith.cmpi slt, %arg1, %c1_i32 : i32
    %110 = arith.extui %109 : i1 to i32
    %c0_i32_36 = arith.constant 0 : i32
    %111 = arith.cmpi ne, %110, %c0_i32_36 : i32
    scf.if %111 {
      %c0_39 = arith.constant 0 : index
      %c0_40 = arith.constant 0 : index
      %115 = vector.load %arg13[%c0_39, %c0_40] : memref<16x128xf32, #tpu.memory_space<vmem>>, vector<16x128xf32>
      tpu.vector_store %arg13[%c0_39, %c0_40], %108 {strides = array<i32>} : memref<16x128xf32, #tpu.memory_space<vmem>>, vector<16x128xf32>,
    } else {
    }
    %c1_i32_37 = arith.constant 1 : i32
    %112 = arith.cmpi eq, %arg1, %c1_i32_37 : i32
    %113 = arith.extui %112 : i1 to i32
    %c0_i32_38 = arith.constant 0 : i32
    %114 = arith.cmpi ne, %113, %c0_i32_38 : i32
    scf.if %114 {
      %c0_39 = arith.constant 0 : index
      %c0_40 = arith.constant 0 : index
      %115 = vector.load %arg11[%c0_39, %c0_40] : memref<1x1xf32, #tpu.memory_space<vmem>>, vector<1x1xf32>
      %c0_41 = arith.constant 0 : index
      %c0_42 = arith.constant 0 : index
      %116 = vector.load %arg2[%c0_41, %c0_42] : memref<16x128xf32, #tpu.memory_space<vmem>>, vector<16x128xf32>
      %117 = vector.broadcast %115 : vector<1x1xf32> to vector<16x128xf32>
      %118 = arith.mulf %117, %116 : vector<16x128xf32>
      %cst_43 = arith.constant 1.000000e+00 : f32
      %119 = vector.broadcast %cst_43 : f32 to vector<1x1xf32>
      %120 = arith.subf %119, %115 : vector<1x1xf32>
      %121 = vector.broadcast %120 : vector<1x1xf32> to vector<16x128xf32>
      %122 = arith.mulf %121, %108 : vector<16x128xf32>
      %123 = arith.addf %118, %122 : vector<16x128xf32>
      %c0_44 = arith.constant 0 : index
      %c0_45 = arith.constant 0 : index
      %124 = vector.load %arg12[%c0_44, %c0_45] : memref<16x128xf32, #tpu.memory_space<vmem>>, vector<16x128xf32>
      tpu.vector_store %arg12[%c0_44, %c0_45], %123 {strides = array<i32>} : memref<16x128xf32, #tpu.memory_space<vmem>>, vector<16x128xf32>,
    } else {
    }
    return
  }
  func.func @transform_0(%arg0: i32, %arg1: i32) -> (i32, i32) {
    %c0_i32 = arith.constant 0 : i32
    %c0_i32_0 = arith.constant 0 : i32
    return %arg0, %c0_i32 : i32, i32
  }
  func.func @transform_1(%arg0: i32, %arg1: i32) -> (i32, i32) {
    %c0_i32 = arith.constant 0 : i32
    %c0_i32_0 = arith.constant 0 : i32
    return %arg0, %c0_i32 : i32, i32
  }
  func.func @transform_2(%arg0: i32, %arg1: i32) -> (i32, i32) {
    %c0_i32 = arith.constant 0 : i32
    %c0_i32_0 = arith.constant 0 : i32
    %c0_i32_1 = arith.constant 0 : i32
    return %c0_i32, %c0_i32_0 : i32, i32
  }
  func.func @transform_3(%arg0: i32, %arg1: i32) -> (i32, i32) {
    %c0_i32 = arith.constant 0 : i32
    %c0_i32_0 = arith.constant 0 : i32
    %c0_i32_1 = arith.constant 0 : i32
    return %c0_i32, %c0_i32_0 : i32, i32
  }
  func.func @transform_4(%arg0: i32, %arg1: i32) -> (i32, i32) {
    %c0_i32 = arith.constant 0 : i32
    %c0_i32_0 = arith.constant 0 : i32
    %c0_i32_1 = arith.constant 0 : i32
    return %c0_i32, %c0_i32_0 : i32, i32
  }
  func.func @transform_5(%arg0: i32, %arg1: i32) -> (i32, i32) {
    %c0_i32 = arith.constant 0 : i32
    %c0_i32_0 = arith.constant 0 : i32
    %c0_i32_1 = arith.constant 0 : i32
    return %c0_i32, %c0_i32_0 : i32, i32
  }
  func.func @transform_6(%arg0: i32, %arg1: i32) -> (i32, i32, i32) {
    %c0_i32 = arith.constant 0 : i32
    %c0_i32_0 = arith.constant 0 : i32
    %c0_i32_1 = arith.constant 0 : i32
    %c0_i32_2 = arith.constant 0 : i32
    return %c0_i32, %c0_i32_0, %c0_i32_1 : i32, i32, i32
  }
  func.func @transform_7(%arg0: i32, %arg1: i32) -> (i32, i32, i32) {
    %c0_i32 = arith.constant 0 : i32
    %c0_i32_0 = arith.constant 0 : i32
    %c0_i32_1 = arith.constant 0 : i32
    %c0_i32_2 = arith.constant 0 : i32
    return %c0_i32, %c0_i32_0, %c0_i32_1 : i32, i32, i32
  }
  func.func @transform_8(%arg0: i32, %arg1: i32) -> (i32, i32, i32) {
    %c0_i32 = arith.constant 0 : i32
    %c0_i32_0 = arith.constant 0 : i32
    %c0_i32_1 = arith.constant 0 : i32
    %c0_i32_2 = arith.constant 0 : i32
    return %c0_i32, %c0_i32_0, %c0_i32_1 : i32, i32, i32
  }
  func.func @transform_9(%arg0: i32, %arg1: i32) -> (i32, i32) {
    %c0_i32 = arith.constant 0 : i32
    %c0_i32_0 = arith.constant 0 : i32
    %c0_i32_1 = arith.constant 0 : i32
    return %c0_i32, %c0_i32_0 : i32, i32
  }
  func.func @transform_10(%arg0: i32, %arg1: i32) -> (i32, i32) {
    %c0_i32 = arith.constant 0 : i32
    %c0_i32_0 = arith.constant 0 : i32
    return %arg0, %c0_i32 : i32, i32
  }
}

module attributes {stable_mosaic.version = 11 : i64} {
  func.func @fnet_stack_kernel(%arg0: i32, %arg1: i32, %arg2: memref<32x128xf32, #tpu.memory_space<vmem>>, %arg3: memref<32x1xf32, #tpu.memory_space<vmem>>, %arg4: memref<16x128xf32, #tpu.memory_space<vmem>>, %arg5: memref<128x256xbf16, #tpu.memory_space<vmem>>, %arg6: memref<16x16xbf16, #tpu.memory_space<vmem>>, %arg7: memref<16x16xbf16, #tpu.memory_space<vmem>>, %arg8: memref<2x8x128xf32, #tpu.memory_space<vmem>>, %arg9: memref<2x128x128xbf16, #tpu.memory_space<vmem>>, %arg10: memref<2x128x128xbf16, #tpu.memory_space<vmem>>, %arg11: memref<1x1xf32, #tpu.memory_space<vmem>>, %arg12: memref<32x128xf32, #tpu.memory_space<vmem>>, %arg13: memref<32x128xf32, #tpu.memory_space<vmem>>) attributes {dimension_semantics = [#tpu.dimension_semantics<parallel>, #tpu.dimension_semantics<arbitrary>], iteration_bounds = array<i64: 1, 2>, scalar_prefetch = 0 : i64, scratch_operands = 1 : i64, tpu.core_type = #tpu.core_type<tc>, window_params = [{transform_indices = @transform_0, window_bounds = array<i64: 32, 128>}, {transform_indices = @transform_1, window_bounds = array<i64: 32, 1>}, {pipeline_mode = #tpu.pipeline_mode<synchronous>, transform_indices = @transform_2, window_bounds = array<i64: 16, 128>}, {pipeline_mode = #tpu.pipeline_mode<synchronous>, transform_indices = @transform_3, window_bounds = array<i64: 128, 256>}, {pipeline_mode = #tpu.pipeline_mode<synchronous>, transform_indices = @transform_4, window_bounds = array<i64: 16, 16>}, {pipeline_mode = #tpu.pipeline_mode<synchronous>, transform_indices = @transform_5, window_bounds = array<i64: 16, 16>}, {pipeline_mode = #tpu.pipeline_mode<synchronous>, transform_indices = @transform_6, window_bounds = array<i64: 2, 8, 128>}, {pipeline_mode = #tpu.pipeline_mode<synchronous>, transform_indices = @transform_7, window_bounds = array<i64: 2, 128, 128>}, {pipeline_mode = #tpu.pipeline_mode<synchronous>, transform_indices = @transform_8, window_bounds = array<i64: 2, 128, 128>}, {pipeline_mode = #tpu.pipeline_mode<synchronous>, transform_indices = @transform_9, window_bounds = array<i64: 1, 1>}, {transform_indices = @transform_10, window_bounds = array<i64: 32, 128>}]} {
    %c0_i32 = arith.constant 0 : i32
    %0 = arith.cmpi eq, %arg1, %c0_i32 : i32
    %1 = arith.extui %0 : i1 to i32
    %c0_i32_0 = arith.constant 0 : i32
    %2 = arith.cmpi ne, %1, %c0_i32_0 : i32
    scf.if %2 {
      %c0_39 = arith.constant 0 : index
      %c0_40 = arith.constant 0 : index
      %115 = vector.load %arg4[%c0_39, %c0_40] : memref<16x128xf32, #tpu.memory_space<vmem>>, vector<16x128xf32>
      %c0_41 = arith.constant 0 : index
      %c0_42 = arith.constant 0 : index
      %116 = vector.load %arg2[%c0_41, %c0_42] : memref<32x128xf32, #tpu.memory_space<vmem>>, vector<16x128xf32>
      %117 = arith.addf %116, %115 : vector<16x128xf32>
      %c0_43 = arith.constant 0 : index
      %c0_44 = arith.constant 0 : index
      %118 = vector.load %arg3[%c0_43, %c0_44] : memref<32x1xf32, #tpu.memory_space<vmem>>, vector<16x1xf32>
      %119 = vector.broadcast %118 : vector<16x1xf32> to vector<16x128xf32>
      %120 = arith.mulf %117, %119 : vector<16x128xf32>
      %c0_45 = arith.constant 0 : index
      %c0_46 = arith.constant 0 : index
      %121 = vector.load %arg13[%c0_45, %c0_46] : memref<32x128xf32, #tpu.memory_space<vmem>>, vector<16x128xf32>
      tpu.vector_store %arg13[%c0_45, %c0_46], %120 {strides = array<i32>} : memref<32x128xf32, #tpu.memory_space<vmem>>, vector<16x128xf32>,
      %c16 = arith.constant 16 : index
      %c0_47 = arith.constant 0 : index
      %122 = vector.load %arg2[%c16, %c0_47] : memref<32x128xf32, #tpu.memory_space<vmem>>, vector<16x128xf32>
      %123 = arith.addf %122, %115 : vector<16x128xf32>
      %c16_48 = arith.constant 16 : index
      %c0_49 = arith.constant 0 : index
      %124 = vector.load %arg3[%c16_48, %c0_49] : memref<32x1xf32, #tpu.memory_space<vmem>>, vector<16x1xf32>
      %125 = vector.broadcast %124 : vector<16x1xf32> to vector<16x128xf32>
      %126 = arith.mulf %123, %125 : vector<16x128xf32>
      %c16_50 = arith.constant 16 : index
      %c0_51 = arith.constant 0 : index
      %127 = vector.load %arg13[%c16_50, %c0_51] : memref<32x128xf32, #tpu.memory_space<vmem>>, vector<16x128xf32>
      tpu.vector_store %arg13[%c16_50, %c0_51], %126 {strides = array<i32>} : memref<32x128xf32, #tpu.memory_space<vmem>>, vector<16x128xf32>,
    } else {
    }
    %c0 = arith.constant 0 : index
    %c0_1 = arith.constant 0 : index
    %3 = vector.load %arg13[%c0, %c0_1] : memref<32x128xf32, #tpu.memory_space<vmem>>, vector<32x128xf32>
    %c0_2 = arith.constant 0 : index
    %c0_3 = arith.constant 0 : index
    %4 = vector.load %arg3[%c0_2, %c0_3] : memref<32x1xf32, #tpu.memory_space<vmem>>, vector<32x1xf32>
    %5 = arith.index_cast %arg1 : i32 to index
    %c0_4 = arith.constant 0 : index
    %c0_5 = arith.constant 0 : index
    %6 = vector.load %arg8[%5, %c0_4, %c0_5] : memref<2x8x128xf32, #tpu.memory_space<vmem>>, vector<1x8x128xf32>
    %7 = vector.shape_cast %6 : vector<1x8x128xf32> to vector<8x128xf32>
    %8 = vector.extract_strided_slice %7 {offsets = [0, 0], sizes = [1, 128], strides = [1, 1]} : vector<8x128xf32> to vector<1x128xf32>
    %9 = vector.extract_strided_slice %7 {offsets = [1, 0], sizes = [1, 128], strides = [1, 1]} : vector<8x128xf32> to vector<1x128xf32>
    %10 = vector.extract_strided_slice %7 {offsets = [2, 0], sizes = [1, 128], strides = [1, 1]} : vector<8x128xf32> to vector<1x128xf32>
    %11 = vector.extract_strided_slice %7 {offsets = [3, 0], sizes = [1, 128], strides = [1, 1]} : vector<8x128xf32> to vector<1x128xf32>
    %12 = vector.extract_strided_slice %7 {offsets = [4, 0], sizes = [1, 128], strides = [1, 1]} : vector<8x128xf32> to vector<1x128xf32>
    %13 = vector.extract_strided_slice %7 {offsets = [5, 0], sizes = [1, 128], strides = [1, 1]} : vector<8x128xf32> to vector<1x128xf32>
    %14 = arith.index_cast %arg1 : i32 to index
    %c0_6 = arith.constant 0 : index
    %c0_7 = arith.constant 0 : index
    %15 = vector.load %arg9[%14, %c0_6, %c0_7] : memref<2x128x128xbf16, #tpu.memory_space<vmem>>, vector<1x128x128xbf16>
    %16 = vector.shape_cast %15 : vector<1x128x128xbf16> to vector<128x128xbf16>
    %17 = arith.index_cast %arg1 : i32 to index
    %c0_8 = arith.constant 0 : index
    %c0_9 = arith.constant 0 : index
    %18 = vector.load %arg10[%17, %c0_8, %c0_9] : memref<2x128x128xbf16, #tpu.memory_space<vmem>>, vector<1x128x128xbf16>
    %19 = vector.shape_cast %18 : vector<1x128x128xbf16> to vector<128x128xbf16>
    %20 = arith.truncf %3 : vector<32x128xf32> to vector<32x128xbf16>
    %c0_10 = arith.constant 0 : index
    %c0_11 = arith.constant 0 : index
    %21 = vector.load %arg5[%c0_10, %c0_11] : memref<128x256xbf16, #tpu.memory_space<vmem>>, vector<128x256xbf16>
    %cst = arith.constant dense<0.000000e+00> : vector<32x256xf32>
    %22 = tpu.matmul %20, %21, %cst {dimension_numbers = #tpu.dot_dimension_numbers<[1], [0], [0], [1], [0, 0, 1, 1], [], []>} : vector<32x128xbf16>, vector<128x256xbf16>, vector<32x256xf32> -> vector<32x256xf32>
    %c0_12 = arith.constant 0 : index
    %c0_13 = arith.constant 0 : index
    %23 = vector.load %arg6[%c0_12, %c0_13] : memref<16x16xbf16, #tpu.memory_space<vmem>>, vector<16x16xbf16>
    %c0_14 = arith.constant 0 : index
    %c0_15 = arith.constant 0 : index
    %24 = vector.load %arg7[%c0_14, %c0_15] : memref<16x16xbf16, #tpu.memory_space<vmem>>, vector<16x16xbf16>
    %25 = vector.extract_strided_slice %22 {offsets = [0, 0], sizes = [16, 128], strides = [1, 1]} : vector<32x256xf32> to vector<16x128xf32>
    %26 = arith.truncf %25 : vector<16x128xf32> to vector<16x128xbf16>
    %27 = vector.extract_strided_slice %22 {offsets = [0, 128], sizes = [16, 128], strides = [1, 1]} : vector<32x256xf32> to vector<16x128xf32>
    %28 = arith.truncf %27 : vector<16x128xf32> to vector<16x128xbf16>
    %cst_16 = arith.constant dense<0.000000e+00> : vector<16x128xf32>
    %29 = tpu.matmul %23, %26, %cst_16 {dimension_numbers = #tpu.dot_dimension_numbers<[1], [0], [0], [1], [0, 0, 1, 1], [], []>} : vector<16x16xbf16>, vector<16x128xbf16>, vector<16x128xf32> -> vector<16x128xf32>
    %cst_17 = arith.constant dense<0.000000e+00> : vector<16x128xf32>
    %30 = tpu.matmul %24, %28, %cst_17 {dimension_numbers = #tpu.dot_dimension_numbers<[1], [0], [0], [1], [0, 0, 1, 1], [], []>} : vector<16x16xbf16>, vector<16x128xbf16>, vector<16x128xf32> -> vector<16x128xf32>
    %31 = arith.subf %29, %30 : vector<16x128xf32>
    %32 = vector.extract_strided_slice %22 {offsets = [16, 0], sizes = [16, 128], strides = [1, 1]} : vector<32x256xf32> to vector<16x128xf32>
    %33 = arith.truncf %32 : vector<16x128xf32> to vector<16x128xbf16>
    %34 = vector.extract_strided_slice %22 {offsets = [16, 128], sizes = [16, 128], strides = [1, 1]} : vector<32x256xf32> to vector<16x128xf32>
    %35 = arith.truncf %34 : vector<16x128xf32> to vector<16x128xbf16>
    %cst_18 = arith.constant dense<0.000000e+00> : vector<16x128xf32>
    %36 = tpu.matmul %23, %33, %cst_18 {dimension_numbers = #tpu.dot_dimension_numbers<[1], [0], [0], [1], [0, 0, 1, 1], [], []>} : vector<16x16xbf16>, vector<16x128xbf16>, vector<16x128xf32> -> vector<16x128xf32>
    %cst_19 = arith.constant dense<0.000000e+00> : vector<16x128xf32>
    %37 = tpu.matmul %24, %35, %cst_19 {dimension_numbers = #tpu.dot_dimension_numbers<[1], [0], [0], [1], [0, 0, 1, 1], [], []>} : vector<16x16xbf16>, vector<16x128xbf16>, vector<16x128xf32> -> vector<16x128xf32>
    %38 = arith.subf %36, %37 : vector<16x128xf32>
    %39 = tpu.concatenate %31, %38 in 0 : vector<16x128xf32>, vector<16x128xf32> -> vector<32x128xf32>
    %40 = vector.broadcast %4 : vector<32x1xf32> to vector<32x128xf32>
    %41 = arith.mulf %39, %40 : vector<32x128xf32>
    %42 = arith.addf %41, %3 : vector<32x128xf32>
    %cst_20 = arith.constant dense<0.000000e+00> : vector<32xf32>
    %43 = vector.multi_reduction <add>, %42, %cst_20 [1] : vector<32x128xf32> to vector<32xf32>
    %44 = vector.shape_cast %43 : vector<32xf32> to vector<32x1xf32>
    %cst_21 = arith.constant 3.125000e-02 : f32
    %45 = vector.broadcast %cst_21 : f32 to vector<32x1xf32>
    %46 = arith.mulf %44, %45 : vector<32x1xf32>
    %47 = arith.mulf %42, %42 : vector<32x128xf32>
    %cst_22 = arith.constant dense<0.000000e+00> : vector<32xf32>
    %48 = vector.multi_reduction <add>, %47, %cst_22 [1] : vector<32x128xf32> to vector<32xf32>
    %49 = vector.shape_cast %48 : vector<32xf32> to vector<32x1xf32>
    %cst_23 = arith.constant 3.125000e-02 : f32
    %50 = vector.broadcast %cst_23 : f32 to vector<32x1xf32>
    %51 = arith.mulf %49, %50 : vector<32x1xf32>
    %52 = arith.mulf %46, %46 : vector<32x1xf32>
    %53 = arith.subf %51, %52 : vector<32x1xf32>
    %54 = vector.broadcast %46 : vector<32x1xf32> to vector<32x128xf32>
    %55 = arith.subf %42, %54 : vector<32x128xf32>
    %cst_24 = arith.constant 9.99999974E-6 : f32
    %56 = vector.broadcast %cst_24 : f32 to vector<32x1xf32>
    %57 = arith.addf %53, %56 : vector<32x1xf32>
    %58 = math.rsqrt %57 : vector<32x1xf32>
    %59 = vector.broadcast %58 : vector<32x1xf32> to vector<32x128xf32>
    %60 = arith.mulf %55, %59 : vector<32x128xf32>
    %61 = vector.broadcast %8 : vector<1x128xf32> to vector<32x128xf32>
    %62 = arith.mulf %60, %61 : vector<32x128xf32>
    %63 = vector.broadcast %9 : vector<1x128xf32> to vector<32x128xf32>
    %64 = arith.addf %62, %63 : vector<32x128xf32>
    %65 = arith.truncf %64 : vector<32x128xf32> to vector<32x128xbf16>
    %cst_25 = arith.constant dense<0.000000e+00> : vector<32x128xf32>
    %66 = tpu.matmul %65, %16, %cst_25 {dimension_numbers = #tpu.dot_dimension_numbers<[1], [0], [0], [1], [0, 0, 1, 1], [], []>} : vector<32x128xbf16>, vector<128x128xbf16>, vector<32x128xf32> -> vector<32x128xf32>
    %67 = vector.broadcast %12 : vector<1x128xf32> to vector<32x128xf32>
    %68 = arith.addf %66, %67 : vector<32x128xf32>
    %cst_26 = arith.constant 5.000000e-01 : f32
    %69 = vector.broadcast %cst_26 : f32 to vector<32x128xf32>
    %70 = arith.mulf %69, %68 : vector<32x128xf32>
    %cst_27 = arith.constant 4.471500e-02 : f32
    %71 = vector.broadcast %cst_27 : f32 to vector<32x128xf32>
    %72 = arith.mulf %71, %68 : vector<32x128xf32>
    %73 = arith.mulf %72, %68 : vector<32x128xf32>
    %74 = arith.mulf %73, %68 : vector<32x128xf32>
    %75 = arith.addf %68, %74 : vector<32x128xf32>
    %cst_28 = arith.constant 0.797884583 : f32
    %76 = vector.broadcast %cst_28 : f32 to vector<32x128xf32>
    %77 = arith.mulf %76, %75 : vector<32x128xf32>
    %78 = math.tanh %77 : vector<32x128xf32>
    %cst_29 = arith.constant 1.000000e+00 : f32
    %79 = vector.broadcast %cst_29 : f32 to vector<32x128xf32>
    %80 = arith.addf %79, %78 : vector<32x128xf32>
    %81 = arith.mulf %70, %80 : vector<32x128xf32>
    %82 = arith.truncf %81 : vector<32x128xf32> to vector<32x128xbf16>
    %cst_30 = arith.constant dense<0.000000e+00> : vector<32x128xf32>
    %83 = tpu.matmul %82, %19, %cst_30 {dimension_numbers = #tpu.dot_dimension_numbers<[1], [0], [0], [1], [0, 0, 1, 1], [], []>} : vector<32x128xbf16>, vector<128x128xbf16>, vector<32x128xf32> -> vector<32x128xf32>
    %84 = vector.broadcast %13 : vector<1x128xf32> to vector<32x128xf32>
    %85 = arith.addf %83, %84 : vector<32x128xf32>
    %86 = arith.addf %85, %64 : vector<32x128xf32>
    %cst_31 = arith.constant dense<0.000000e+00> : vector<32xf32>
    %87 = vector.multi_reduction <add>, %86, %cst_31 [1] : vector<32x128xf32> to vector<32xf32>
    %88 = vector.shape_cast %87 : vector<32xf32> to vector<32x1xf32>
    %cst_32 = arith.constant 3.125000e-02 : f32
    %89 = vector.broadcast %cst_32 : f32 to vector<32x1xf32>
    %90 = arith.mulf %88, %89 : vector<32x1xf32>
    %91 = arith.mulf %86, %86 : vector<32x128xf32>
    %cst_33 = arith.constant dense<0.000000e+00> : vector<32xf32>
    %92 = vector.multi_reduction <add>, %91, %cst_33 [1] : vector<32x128xf32> to vector<32xf32>
    %93 = vector.shape_cast %92 : vector<32xf32> to vector<32x1xf32>
    %cst_34 = arith.constant 3.125000e-02 : f32
    %94 = vector.broadcast %cst_34 : f32 to vector<32x1xf32>
    %95 = arith.mulf %93, %94 : vector<32x1xf32>
    %96 = arith.mulf %90, %90 : vector<32x1xf32>
    %97 = arith.subf %95, %96 : vector<32x1xf32>
    %98 = vector.broadcast %90 : vector<32x1xf32> to vector<32x128xf32>
    %99 = arith.subf %86, %98 : vector<32x128xf32>
    %cst_35 = arith.constant 9.99999974E-6 : f32
    %100 = vector.broadcast %cst_35 : f32 to vector<32x1xf32>
    %101 = arith.addf %97, %100 : vector<32x1xf32>
    %102 = math.rsqrt %101 : vector<32x1xf32>
    %103 = vector.broadcast %102 : vector<32x1xf32> to vector<32x128xf32>
    %104 = arith.mulf %99, %103 : vector<32x128xf32>
    %105 = vector.broadcast %10 : vector<1x128xf32> to vector<32x128xf32>
    %106 = arith.mulf %104, %105 : vector<32x128xf32>
    %107 = vector.broadcast %11 : vector<1x128xf32> to vector<32x128xf32>
    %108 = arith.addf %106, %107 : vector<32x128xf32>
    %c1_i32 = arith.constant 1 : i32
    %109 = arith.cmpi slt, %arg1, %c1_i32 : i32
    %110 = arith.extui %109 : i1 to i32
    %c0_i32_36 = arith.constant 0 : i32
    %111 = arith.cmpi ne, %110, %c0_i32_36 : i32
    scf.if %111 {
      %c0_39 = arith.constant 0 : index
      %c0_40 = arith.constant 0 : index
      %115 = vector.load %arg13[%c0_39, %c0_40] : memref<32x128xf32, #tpu.memory_space<vmem>>, vector<32x128xf32>
      tpu.vector_store %arg13[%c0_39, %c0_40], %108 {strides = array<i32>} : memref<32x128xf32, #tpu.memory_space<vmem>>, vector<32x128xf32>,
    } else {
    }
    %c1_i32_37 = arith.constant 1 : i32
    %112 = arith.cmpi eq, %arg1, %c1_i32_37 : i32
    %113 = arith.extui %112 : i1 to i32
    %c0_i32_38 = arith.constant 0 : i32
    %114 = arith.cmpi ne, %113, %c0_i32_38 : i32
    scf.if %114 {
      %c0_39 = arith.constant 0 : index
      %c0_40 = arith.constant 0 : index
      %115 = vector.load %arg11[%c0_39, %c0_40] : memref<1x1xf32, #tpu.memory_space<vmem>>, vector<1x1xf32>
      %c0_41 = arith.constant 0 : index
      %c0_42 = arith.constant 0 : index
      %116 = vector.load %arg2[%c0_41, %c0_42] : memref<32x128xf32, #tpu.memory_space<vmem>>, vector<32x128xf32>
      %117 = vector.broadcast %115 : vector<1x1xf32> to vector<32x128xf32>
      %118 = arith.mulf %117, %116 : vector<32x128xf32>
      %cst_43 = arith.constant 1.000000e+00 : f32
      %119 = vector.broadcast %cst_43 : f32 to vector<1x1xf32>
      %120 = arith.subf %119, %115 : vector<1x1xf32>
      %121 = vector.broadcast %120 : vector<1x1xf32> to vector<32x128xf32>
      %122 = arith.mulf %121, %108 : vector<32x128xf32>
      %123 = arith.addf %118, %122 : vector<32x128xf32>
      %c0_44 = arith.constant 0 : index
      %c0_45 = arith.constant 0 : index
      %124 = vector.load %arg12[%c0_44, %c0_45] : memref<32x128xf32, #tpu.memory_space<vmem>>, vector<32x128xf32>
      tpu.vector_store %arg12[%c0_44, %c0_45], %123 {strides = array<i32>} : memref<32x128xf32, #tpu.memory_space<vmem>>, vector<32x128xf32>,
    } else {
    }
    return
  }
  func.func @transform_0(%arg0: i32, %arg1: i32) -> (i32, i32) {
    %c0_i32 = arith.constant 0 : i32
    %c0_i32_0 = arith.constant 0 : i32
    return %arg0, %c0_i32 : i32, i32
  }
  func.func @transform_1(%arg0: i32, %arg1: i32) -> (i32, i32) {
    %c0_i32 = arith.constant 0 : i32
    %c0_i32_0 = arith.constant 0 : i32
    return %arg0, %c0_i32 : i32, i32
  }
  func.func @transform_2(%arg0: i32, %arg1: i32) -> (i32, i32) {
    %c0_i32 = arith.constant 0 : i32
    %c0_i32_0 = arith.constant 0 : i32
    %c0_i32_1 = arith.constant 0 : i32
    return %c0_i32, %c0_i32_0 : i32, i32
  }
  func.func @transform_3(%arg0: i32, %arg1: i32) -> (i32, i32) {
    %c0_i32 = arith.constant 0 : i32
    %c0_i32_0 = arith.constant 0 : i32
    %c0_i32_1 = arith.constant 0 : i32
    return %c0_i32, %c0_i32_0 : i32, i32
  }
  func.func @transform_4(%arg0: i32, %arg1: i32) -> (i32, i32) {
    %c0_i32 = arith.constant 0 : i32
    %c0_i32_0 = arith.constant 0 : i32
    %c0_i32_1 = arith.constant 0 : i32
    return %c0_i32, %c0_i32_0 : i32, i32
  }
  func.func @transform_5(%arg0: i32, %arg1: i32) -> (i32, i32) {
    %c0_i32 = arith.constant 0 : i32
    %c0_i32_0 = arith.constant 0 : i32
    %c0_i32_1 = arith.constant 0 : i32
    return %c0_i32, %c0_i32_0 : i32, i32
  }
  func.func @transform_6(%arg0: i32, %arg1: i32) -> (i32, i32, i32) {
    %c0_i32 = arith.constant 0 : i32
    %c0_i32_0 = arith.constant 0 : i32
    %c0_i32_1 = arith.constant 0 : i32
    %c0_i32_2 = arith.constant 0 : i32
    return %c0_i32, %c0_i32_0, %c0_i32_1 : i32, i32, i32
  }
  func.func @transform_7(%arg0: i32, %arg1: i32) -> (i32, i32, i32) {
    %c0_i32 = arith.constant 0 : i32
    %c0_i32_0 = arith.constant 0 : i32
    %c0_i32_1 = arith.constant 0 : i32
    %c0_i32_2 = arith.constant 0 : i32
    return %c0_i32, %c0_i32_0, %c0_i32_1 : i32, i32, i32
  }
  func.func @transform_8(%arg0: i32, %arg1: i32) -> (i32, i32, i32) {
    %c0_i32 = arith.constant 0 : i32
    %c0_i32_0 = arith.constant 0 : i32
    %c0_i32_1 = arith.constant 0 : i32
    %c0_i32_2 = arith.constant 0 : i32
    return %c0_i32, %c0_i32_0, %c0_i32_1 : i32, i32, i32
  }
  func.func @transform_9(%arg0: i32, %arg1: i32) -> (i32, i32) {
    %c0_i32 = arith.constant 0 : i32
    %c0_i32_0 = arith.constant 0 : i32
    %c0_i32_1 = arith.constant 0 : i32
    return %c0_i32, %c0_i32_0 : i32, i32
  }
  func.func @transform_10(%arg0: i32, %arg1: i32) -> (i32, i32) {
    %c0_i32 = arith.constant 0 : i32
    %c0_i32_0 = arith.constant 0 : i32
    return %arg0, %c0_i32 : i32, i32
  }
}

</mosaic_0001>

<bundles_post_ra>
// kernel: contextualization_forward.3
= control target key start
LH: loop header
LB: loop body
LE: loop exit
PB: predicated region body
PF: predicated region fallthrough
CT: control target
= control target key end

     0   :  { %s2243_s0 = inlined_call_operand.vmem [shape: f32[32,128], index: 0, kind: input, shape index: {}]   ;;  %s2244_s1 = inlined_call_operand.vmem [shape: f32[32,1], index: 1, kind: input, shape index: {}]   ;;  %s2245_s2 = inlined_call_operand.vmem [shape: f32[16,128], index: 2, kind: input, shape index: {}]   ;;  %s2246_s3 = inlined_call_operand.hbm [shape: bf16[128,256], index: 3, kind: input, shape index: {}]   ;;  %s2247_s4 = inlined_call_operand.vmem [shape: bf16[16,16], index: 4, kind: input, shape index: {}]   ;;  %s2248_s5 = inlined_call_operand.vmem [shape: bf16[16,16], index: 5, kind: input, shape index: {}]   ;;  %s2249_s6 = inlined_call_operand.vmem [shape: f32[2,8,128], index: 6, kind: input, shape index: {}]   ;;  %s2250_s7 = inlined_call_operand.hbm [shape: bf16[2,128,128], index: 7, kind: input, shape index: {}]   ;;  %s2251_s8 = inlined_call_operand.hbm [shape: bf16[2,128,128], index: 8, kind: input, shape index: {}]   ;;  %s2252_s9 = inlined_call_operand.<no memory space> [shape: f32[1,1], index: 9, kind: input, shape index: {}]   ;;  %s2253_s10 = inlined_call_operand.hbm [shape: f32[32,128], index: 10, kind: output, shape index: {}]  }
   0x1   :  { %v15_v0 = vstv %s2252_s9 }
   0x2   :  { %16 = vst [vmem:[#allocation3] sm:$0x1] %v15_v0 }
   0x3   :  { %17 = vsyncpa [#allocation5], 0 }
   0x4   :  { %18 = vsyncpa [#allocation8], 0 }
   0x5   :  { %19 = vsyncpa [#allocation6], 0  ;;  %s1961_s15 = smov 0   ;;  %s1963_s16 = smov 0  }
   0x6   :  { %s1965_s17 = smov 0  }
   0x7 LB: > { %s1888_s9 = smov [#allocation7]   ;;  %s1452_s19 = sadd.s32 4294967295, %s1886_s17   ;;  %s1886_s17 = sphi %s1965_s17, %s25_s17   ;;  %s1882_s16 = sphi %s1963_s16, %s2260_s16   ;;  %s1878_s15 = sphi %s1961_s15, %s2259_s15  }
   0x8   : > { %s343_s18 = sshll.u32 %s1888_s9, 4  ;;  %p1453_p0 = scmp.ge.s32.totalorder %s1886_s17, 1  ;;  %s344_s18 = int_to_ptr.vmem [resolvable:$true] %s343_s18 }
   0x9   : > { %p288_p1 = scmp.lt.s32.totalorder %s1886_s17, 3  ;;  %p1981_p2 = scmp.eq.s32.totalorder %s1452_s19, 0 }
   0xa   : > { %s34_s23 = sadd.s32 1, %s1882_s16  ;;  %s1889_s25 = smov [#allocation4]  }
   0xb   : > { %p1985_p3 = pnand %p1453_p0, %p288_p1  ;;  %p1998_p6 = scmp.ge.s32.totalorder %s34_s23, 2 }
   0xc   : > { %s321_s26 = sshll.u32 %s1889_s25, 4  ;;  %s1761_s27 = scalar_lea.vmem %s344_s18, 2048  ;;  %s322_s26 = int_to_ptr.vmem [resolvable:$true] %s321_s26 }
   0xd   : > { %p1622_p4 = pneg %p1985_p3  ;;  %p1762_p8 = scmp.ne.s32.totalorder %s344_s18, %s1761_s27 }
   0xe   : > { %p1769_p11 = scmp.lt.s32.totalorder %s344_s18, %s344_s18  ;;  %p1770_p12 = scmp.lt.s32.totalorder %s1761_s27, %s1761_s27 }
   0xf   : > { %p1993_p5 = pnand %p1981_p2, %p1622_p4 }
  0x10   : > { %p1771_p13 = por %p1770_p12, %p1769_p11 }
  0x11   : > { %p1752_p7 = pneg %p1993_p5 }
  0x13   : > { %p1764_p9 = pnand %p1762_p8, %p1752_p7 }
  0x15   : > { %p1765_p10 = pneg %p1764_p9 }
  0x17   : > { %p1772_p0 = pnand %p1771_p13, %p1765_p10 }
  0x19   : > { %1775 = shalt.err (!%p1772_p0)
}
  0x1a   : > { %s1890_s28 = smov 64   ;;  %s1891_s29 = smov 4  }
  0x1b   : > { %1628 = dma.hbm_to_vmem [thread:$0]  (!%p1993_p5), %s2250_s7, 2048, %s344_s18, [#allocation8], %s1890_s28, %s1890_s28, %s1891_s29  }
  0x1c   : > { %s2262_s23 = smov (%p1998_p6, %s34_s23), 0  ;;  %s1787_s12 = scalar_lea.vmem %s322_s26, 2048 }
  0x1d   : > { %p1788_p1 = scmp.ne.s32.totalorder %s322_s26, %s1787_s12  ;;  %p1795_p9 = scmp.lt.s32.totalorder %s322_s26, %s322_s26 }
  0x1e   : > { %p1796_p10 = scmp.lt.s32.totalorder %s1787_s12, %s1787_s12 }
  0x1f   : > { %p1790_p4 = pnand %p1788_p1, %p1752_p7 }
  0x20   : > { %p1797_p11 = por %p1796_p10, %p1795_p9 }
  0x21   : > { %p1791_p8 = pneg %p1790_p4 }
  0x23   : > { %p1798_p12 = pnand %p1797_p11, %p1791_p8 }
  0x25   : > { %1801 = shalt.err (!%p1798_p12)
}
  0x26   : > { %s1892_s13 = smov 128   ;;  %s1893_s14 = smov 8  }
  0x27   : > { %1625 = dma.hbm_to_vmem [thread:$0]  (!%p1993_p5), %s2246_s3, 2048, %s322_s26, [#allocation5], %s1892_s13, %s1892_s13, %s1893_s14  }
  0x28   : > { %s1894_s24 = smov [#allocation9]  }
  0x29   : > { %s356_s25 = sshll.u32 %s1894_s24, 4  ;;  %s357_s25 = int_to_ptr.vmem [resolvable:$true] %s356_s25 }
  0x2a   : > { %s1813_s27 = scalar_lea.vmem %s357_s25, 2048  ;;  %p1821_p1 = scmp.lt.s32.totalorder %s357_s25, %s357_s25 }
  0x2b   : > { %p1814_p6 = scmp.ne.s32.totalorder %s357_s25, %s1813_s27  ;;  %p1822_p4 = scmp.lt.s32.totalorder %s1813_s27, %s1813_s27 }
  0x2d   : > { %p1816_p13 = pnand %p1814_p6, %p1752_p7  ;;  %p1823_p8 = por %p1822_p4, %p1821_p1 }
  0x2f   : > { %p1817_p0 = pneg %p1816_p13 }
  0x31   : > { %p1824_p9 = pnand %p1823_p8, %p1817_p0 }
  0x33   : > { %1827 = shalt.err (!%p1824_p9)
}
  0x34   : > { %1631 = dma.hbm_to_vmem [thread:$0]  (!%p1993_p5), %s2251_s8, 2048, %s357_s25, [#allocation8], %s1890_s28, %s1890_s28, %s1891_s29  }
  0x35   : > { %375 = sbr.rel (%p1985_p3) target bundleno = 1604 (0x644), region = 60 }
  0x3a   : > { %1865 = dma.done.wait (%p1981_p2), [#allocation5], 2048  }
  0x3b   : > { %1867 = vsyncadd (%p1981_p2), [#allocation5], 4294965248 }
  0x3c   : > { %1869 = dma.done.wait (%p1981_p2), [#allocation8], 4096  }
  0x3d   : > { %1871 = vsyncadd (%p1981_p2), [#allocation8], 4294963200  ;;  %p1463_p7 = scmp.ne.s32.totalorder %s1878_s15, 0 }
  0x3f   : > { %438 = sbr.rel (%p1463_p7) target bundleno = 201 (0xc9), region = 76 }
  0x44   : > { %v465_v1 = vld [vmem:[%s2244_s1 + $0x10] sm:$0xff]  ;;  %v445_v2 = vld [vmem:[%s2244_s1] sm:$0xff]  ;;  %v1895_v3 = vmov 0   ;;  %v466_v4 = vld [vmem:[%s2244_s1 + $0x18] sm:$0xff] }
  0x45   : > { %1680 = vset.pattern.permute.xlu1 %v1895_v3  ;;  %1679 = vset.pattern.permute.xlu0 %v1895_v3  ;;  %v446_v5 = vld [vmem:[%s2244_s1 + $0x8] sm:$0xff]  ;;  %v461_v6 = vld [vmem:[%s2243_s0 + $0x10] sm:$0xff]  ;;  %v439_v7 = vld [vmem:[%s2245_s2] sm:$0xff] }
  0x46   : > { %469 = vperm.xlu1 %1680, %v465_v1   ;;  %449 = vperm.xlu0 %1679, %v445_v2   ;;  %v441_v8 = vld [vmem:[%s2243_s0] sm:$0xff]  ;;  %v463_v9 = vadd.f32 %v461_v6, %v439_v7  ;;  %v462_v11 = vld [vmem:[%s2243_s0 + $0x18] sm:$0xff]  ;;  %v440_v12 = vld [vmem:[%s2245_s2 + $0x8] sm:$0xff] }
  0x47   : > { %v443_v10 = vadd.f32 %v441_v8, %v439_v7  ;;  %v442_v13 = vld [vmem:[%s2243_s0 + $0x8] sm:$0xff]  ;;  %v464_v18 = vadd.f32 %v462_v11, %v440_v12 }
  0x48   : > { %v444_v19 = vadd.f32 %v442_v13, %v440_v12 }
  0x4a   : > { %474 = vperm.xlu1 %1680, %v466_v4   ;;  %454 = vperm.xlu0 %1679, %v446_v5  }
  0xc1   : > { %v470_v14 = vpop.permute.xlu1 %469  ;;  %v450_v15 = vpop.permute.xlu0 %449 }
  0xc2   : > { %v477_v16 = vmul.f32 %v470_v14, %v463_v9  ;;  %v457_v17 = vmul.f32 %v450_v15, %v443_v10 }
  0xc4   : > { %479 = vst [vmem:[#allocation2 + $0x18] sm:$0xff] %v477_v16  ;;  %459 = vst [vmem:[#allocation2 + $0x10] sm:$0xff] %v457_v17 }
  0xc5   : > { %v475_v20 = vpop.permute.xlu1 %474  ;;  %v455_v21 = vpop.permute.xlu0 %454 }
  0xc6   : > { %v478_v22 = vmul.f32 %v475_v20, %v464_v18  ;;  %v458_v23 = vmul.f32 %v455_v21, %v444_v19 }
  0xc8   : > { %480 = vst [vmem:[#allocation2 + $0x8] sm:$0xff] %v478_v22  ;;  %460 = vst [vmem:[#allocation2] sm:$0xff] %v458_v23 }
  0xc9 PF: > { %v1683_v24 = vld [vmem:[#allocation4 + $0x74] ss:$8 sps:$4 sm:$0xff]   ;;  %v1685_v25 = vld [vmem:[#allocation4 + $0x70] ss:$8 sps:$4 sm:$0xff]   ;;  %v1896_v26 = vmov 0   ;;  %v1897_v47 = vmov 0.0  }
  0xca   : > { %659 = vmatprep.mubr.bf16.mxu0 %v1896_v26  ;;  %1681 = vset.pattern.permute.xlu0 %v1896_v26  ;;  %v1686_v27 = vld [vmem:[#allocation4 + $0x64] ss:$8 sps:$4 sm:$0xff]   ;;  %v1688_v28 = vld [vmem:[#allocation4 + $0x60] ss:$8 sps:$4 sm:$0xff]   ;;  %v1689_v29 = vld [vmem:[#allocation4 + $0x54] ss:$8 sps:$4 sm:$0xff]  }
  0xcb   : > { %627 = vmatprep.subr.bf16.mxu0 %v1683_v24  ;;  %1682 = vset.pattern.permute.xlu1 %v1896_v26  ;;  %v1691_v30 = vld [vmem:[#allocation4 + $0x50] ss:$8 sps:$4 sm:$0xff]   ;;  %v1692_v31 = vld [vmem:[#allocation4 + $0x44] ss:$8 sps:$4 sm:$0xff]   ;;  %v1694_v32 = vld [vmem:[#allocation4 + $0x40] ss:$8 sps:$4 sm:$0xff]  }
  0xcc   : > { %628 = vmatpush1.bf16.msra.mxu0 %v1685_v25  ;;  %v1695_v33 = vld [vmem:[#allocation4 + $0x34] ss:$8 sps:$4 sm:$0xff]   ;;  %v1697_v34 = vld [vmem:[#allocation4 + $0x30] ss:$8 sps:$4 sm:$0xff]   ;;  %v1698_v35 = vld [vmem:[#allocation4 + $0x24] ss:$8 sps:$4 sm:$0xff]   ;;  %1542 = vmatprep.subr.bf16.mxu1 %v1897_v47 }
  0xcd   : > { %629 = vmatprep.subr.bf16.mxu0 %v1686_v27  ;;  %v1700_v36 = vld [vmem:[#allocation4 + $0x20] ss:$8 sps:$4 sm:$0xff]   ;;  %v1701_v37 = vld [vmem:[#allocation4 + $0x14] ss:$8 sps:$4 sm:$0xff]   ;;  %v1703_v38 = vld [vmem:[#allocation4 + $0x10] ss:$8 sps:$4 sm:$0xff]  }
  0xce   : > { %v1704_v39 = vld [vmem:[#allocation4 + $0x4] ss:$8 sps:$4 sm:$0xff]   ;;  %v1706_v40 = vld [vmem:[#allocation4] ss:$8 sps:$4 sm:$0xff]   ;;  %v2085_v44 = vld [vmem:[#allocation2 + $0x18] sm:$0xff]  ;;  %vm1898_vm0 = vmmov 0  }
  0xcf   : > { %v2079_v41 = vld [vmem:[#allocation2 + $0x10] sm:$0xff]  ;;  %v2081_v42 = vld [vmem:[#allocation2] sm:$0xff]  ;;  %v2087_v45 = vld [vmem:[#allocation2 + $0x8] sm:$0xff]  ;;  %1544 = vmatprep.mubr.msk.bf16.mxu1 %vm1898_vm0, %v1897_v47  ;;  %vm691_vm1 = vcmask 130048   ;;  %s1512_s22 = sshll.u32 %s1878_s15, 6  ;;  %s1464_s21 = sshll.u32 %s1878_s15, 3 }
  0xd0   : > { %630 = vmatpush1.bf16.msra.mxu0 %v1688_v28  ;;  %v529_v43 = vpack.c.bf16 %v2081_v42, %v2079_v41  ;;  %v530_v46 = vpack.c.bf16 %v2087_v45, %v2085_v44  ;;  %v485_v48 = vld [vmem:[%s2244_s1] sm:$0xff]  ;;  %v487_v49 = vld [vmem:[%s2244_s1 + $0x10] sm:$0xff]  ;;  %v486_v50 = vld [vmem:[%s2244_s1 + $0x8] sm:$0xff]  ;;  %s494_s28 = scalar_lea.vmem [#allocation7], %s1512_s22  ;;  %s490_s12 = scalar_lea.vmem %s2249_s6, %s1464_s21 }
  0xd1   : > { %631 = vmatprep.subr.bf16.mxu0 %v1689_v29  ;;  %875 = vperm.xlu0 %1681, %v485_v48   ;;  %v488_v51 = vld [vmem:[%s2244_s1 + $0x18] sm:$0xff]  ;;  %v1707_v57 = vld [vmem:[%s2247_s4] sm:$0xff]   ;;  %s512_s20 = scalar_lea.vmem [#allocation9], %s1512_s22  ;;  %p1506_p2 = scmp.ge.s32.totalorder %s1878_s15, 1 }
  0xd2   : > { %885 = vperm.xlu1 %1682, %v487_v49   ;;  %v1708_v62 = vld [vmem:[%s2248_s5] sm:$0xff]  }
  0xd4   : > { %632 = vmatpush1.bf16.msra.mxu0 %v1691_v30 }
  0xd5   : > { %633 = vmatprep.subr.bf16.mxu0 %v1692_v31  ;;  %880 = vperm.xlu0 %1681, %v486_v50  }
  0xd6   : > { %890 = vperm.xlu1 %1682, %v488_v51  }
  0xd8   : > { %634 = vmatpush1.bf16.msra.mxu0 %v1694_v32 }
  0xd9   : > { %635 = vmatprep.subr.bf16.mxu0 %v1695_v33 }
  0xdc   : > { %636 = vmatpush1.bf16.msra.mxu0 %v1697_v34 }
  0xdd   : > { %637 = vmatprep.subr.bf16.mxu0 %v1698_v35 }
  0xe0   : > { %638 = vmatpush1.bf16.msra.mxu0 %v1700_v36 }
  0xe1   : > { %639 = vmatprep.subr.bf16.mxu0 %v1701_v37 }
  0xe4   : > { %640 = vmatpush1.bf16.msra.mxu0 %v1703_v38  ;;  %v1709_v38 = vld [vmem:[%s494_s28 + $0x38] sm:$0xff]  }
  0xe5   : > { %641 = vmatprep.subr.bf16.mxu0 %v1704_v39  ;;  %v1710_v39 = vld [vmem:[%s494_s28 + $0x30] sm:$0xff]  }
  0xe8   : > { %642 = vmatpush1.bf16.msra.mxu0 %v1706_v40  ;;  %v1711_v40 = vld [vmem:[%s494_s28 + $0x28] sm:$0xff]  }
  0xeb   : > { %660 = vmatmul.mubr.bf16.vlgmr.msra.gmra.mxu0 %v529_v43  ;;  %v1714_v43 = vld [vmem:[%s494_s28 + $0x10] sm:$0xff]  }
  0xec   : > { %669 = vmatprep.mubr.bf16.mxu0 %v1896_v26 }
  0xf3   : > { %670 = vmatmul.mubr.bf16.gmra.mxu0 %v530_v46 }
 0x14c   : > { %v876_v6 = vpop.permute.xlu0 %875 }
 0x14d   : > { %v886_v24 = vpop.permute.xlu1 %885 }
 0x150   : > { %v881_v12 = vpop.permute.xlu0 %880 }
 0x151   : > { %v891_v32 = vpop.permute.xlu1 %890 }
 0x1ab   : > { %v661_v52 = vpop.f32.mrf.mxu0 }
 0x1ad   : > { %v663_v53 = vpop.f32.mrf.mxu0 }
 0x1af   : > { %v665_v54 = vpop.f32.mrf.mxu0 }
 0x1b0   : > { %v684_v55 = vpack.c.bf16 %v665_v54, %v661_v52 }
 0x1b1   : > { %v667_v56 = vpop.f32.mrf.mxu0 }
 0x1b2   : > { %1543 = vmatpush3.bf16.msra.mxu1 %v684_v55  ;;  %v685_v59 = vpack.c.bf16 %v667_v56, %v663_v53 }
 0x1b3   : > { %v671_v58 = vpop.f32.mrf.mxu0  ;;  %1548 = vmatprep.subr.bf16.mxu1 %v1897_v47 }
 0x1b5   : > { %v673_v60 = vpop.f32.mrf.mxu0  ;;  %1545 = vmatmul.mubr.msk.bf16.vlgmr.msra.gmra.mxu1 %vm691_vm1, %v1707_v57 }
 0x1b6   : > { %1549 = vmatpush3.bf16.msra.mxu1 %v685_v59  ;;  %1550 = vmatprep.mubr.msk.bf16.mxu1 %vm1898_vm0, %v1897_v47  ;;  %v953_v59 = vlaneseq }
 0x1b7   : > { %1554 = vmatprep.subr.bf16.mxu1 %v1897_v47  ;;  %v675_v61 = vpop.f32.mrf.mxu0 }
 0x1b8   : > { %v787_v63 = vpack.c.bf16 %v675_v61, %v671_v58 }
 0x1b9   : > { %v677_v0 = vpop.f32.mrf.mxu0 }
 0x1ba   : > { %v788_v1 = vpack.c.bf16 %v677_v0, %v673_v60 }
 0x1bd   : > { %1551 = vmatmul.mubr.msk.bf16.vlgmr.msra.gmra.mxu1 %vm691_vm1, %v1708_v62 }
 0x1be   : > { %1555 = vmatpush3.bf16.msra.mxu1 %v787_v63  ;;  %1556 = vmatprep.mubr.msk.bf16.mxu1 %vm1898_vm0, %v1897_v47 }
 0x1bf   : > { %1560 = vmatprep.subr.bf16.mxu1 %v1897_v47 }
 0x1c5   : > { %1557 = vmatmul.mubr.msk.bf16.vlgmr.msra.gmra.mxu1 %vm691_vm1, %v1707_v57 }
 0x1c6   : > { %1561 = vmatpush3.bf16.msra.mxu1 %v788_v1  ;;  %1562 = vmatprep.mubr.msk.bf16.mxu1 %vm1898_vm0, %v1897_v47 }
 0x1c7   : > { %1566 = vmatprep.subr.bf16.mxu1 %v1709_v38 }
 0x1cd   : > { %1563 = vmatmul.mubr.msk.bf16.vlgmr.msra.gmra.mxu1 %vm691_vm1, %v1708_v62  ;;  %v2145_v62 = vshrl.u32 %v953_v59, 7 }
 0x1ce   : > { %1567 = vmatpush3.bf16.msra.mxu1 %v1709_v38 }
 0x1cf   : > { %1568 = vmatprep.subr.bf16.mxu1 %v1710_v39 }
 0x1d2   : > { %1569 = vmatpush3.bf16.msra.mxu1 %v1710_v39 }
 0x1d3   : > { %1570 = vmatprep.subr.bf16.mxu1 %v1711_v40 }
 0x1d6   : > { %1571 = vmatpush3.bf16.msra.mxu1 %v1711_v40 }
 0x275   : > { %v729_v2 = vpop.f32.mrf.mxu1 }
 0x277   : > { %v1546_v3 = vpop.f32.mrf.mxu1 }
 0x279   : > { %v732_v4 = vpop.f32.mrf.mxu1 }
 0x27b   : > { %v1547_v5 = vpop.f32.mrf.mxu1 }
 0x27d   : > { %v778_v7 = vpop.f32.mrf.mxu1 }
 0x27e   : > { %v785_v8 = vsub.f32 %v729_v2, %v778_v7  ;;  %v2153_v7 = vld [vmem:[%s490_s12] sm:$0xff] }
 0x27f   : > { %v1552_v9 = vpop.f32.mrf.mxu1 }
 0x280   : > { %v893_v10 = vmul.f32 %v876_v6, %v785_v8 }
 0x281   : > { %v781_v11 = vpop.f32.mrf.mxu1 }
 0x282   : > { %v2118_v13 = vadd.f32 %v893_v10, %v2079_v41  ;;  %v786_v14 = vsub.f32 %v732_v4, %v781_v11  ;;  %v1712_v41 = vld [vmem:[%s494_s28 + $0x20] sm:$0xff]   ;;  %v2151_v4 = vsub.s32 0, %v2145_v62 }
 0x283   : > { %v1553_v15 = vpop.f32.mrf.mxu1  ;;  %1572 = vmatprep.subr.bf16.mxu1 %v1712_v41 }
 0x284   : > { %v894_v16 = vmul.f32 %v881_v12, %v786_v14  ;;  %901 = vadd.xlane.f32.xlu0 %v2118_v13  ;;  %v913_v17 = vmul.f32 %v2118_v13, %v2118_v13  ;;  %1573 = vmatpush3.bf16.msra.mxu1 %v1712_v41  ;;  %v956_v12 = vrot.slane %v2153_v7, %v2151_v4  ;;  %v963_v14 = vsub.s32 1, %v2145_v62  ;;  %v1717_v41 = vld [vmem:[%s512_s20 + $0x38] sm:$0xff]  }
 0x285   : > { %v823_v18 = vpop.f32.mrf.mxu1  ;;  %1586 = vmatprep.subr.bf16.mxu0 %v1717_v41 }
 0x286   : > { %v2124_v19 = vadd.f32 %v894_v16, %v2081_v42  ;;  %917 = vadd.xlane.f32.xlu1 %v913_v17  ;;  %v1713_v42 = vld [vmem:[%s494_s28 + $0x18] sm:$0xff]   ;;  %1587 = vmatpush3.bf16.msra.mxu0 %v1717_v41 }
 0x287   : > { %v1558_v20 = vpop.f32.mrf.mxu1  ;;  %1574 = vmatprep.subr.bf16.mxu1 %v1713_v42 }
 0x288   : > { %v914_v21 = vmul.f32 %v2124_v19, %v2124_v19  ;;  %1575 = vmatpush3.bf16.msra.mxu1 %v1713_v42  ;;  %v1720_v42 = vld [vmem:[%s512_s20 + $0x20] sm:$0xff]  }
 0x289   : > { %v826_v22 = vpop.f32.mrf.mxu1  ;;  %1576 = vmatprep.subr.bf16.mxu1 %v1714_v43 }
 0x28a   : > { %903 = vadd.xlane.f32.xlu1 %v2124_v19  ;;  %919 = vadd.xlane.f32.xlu0 %v914_v21 }
 0x28b   : > { %v1559_v23 = vpop.f32.mrf.mxu1 }
 0x28c   : > { %1577 = vmatpush3.bf16.msra.mxu1 %v1714_v43  ;;  %v1721_v43 = vld [vmem:[%s512_s20 + $0x18] sm:$0xff]  }
 0x28d   : > { %v864_v25 = vpop.f32.mrf.mxu1 }
 0x28e   : > { %v871_v26 = vsub.f32 %v823_v18, %v864_v25 }
 0x28f   : > { %v1564_v27 = vpop.f32.mrf.mxu1 }
 0x290   : > { %v895_v28 = vmul.f32 %v886_v24, %v871_v26 }
 0x291   : > { %v867_v29 = vpop.f32.mrf.mxu1 }
 0x292   : > { %v872_v30 = vsub.f32 %v826_v22, %v867_v29  ;;  %v2130_v31 = vadd.f32 %v895_v28, %v2085_v44  ;;  %v1715_v44 = vld [vmem:[%s494_s28 + $0x8] sm:$0xff]  }
 0x293   : > { %v1565_v33 = vpop.f32.mrf.mxu1  ;;  %1578 = vmatprep.subr.bf16.mxu1 %v1715_v44 }
 0x294   : > { %v896_v34 = vmul.f32 %v891_v32, %v872_v30  ;;  %905 = vadd.xlane.f32.xlu0 %v2130_v31  ;;  %v915_v35 = vmul.f32 %v2130_v31, %v2130_v31  ;;  %1579 = vmatpush3.bf16.msra.mxu1 %v1715_v44  ;;  %v1722_v44 = vld [vmem:[%s512_s20 + $0x10] sm:$0xff]  }
 0x296   : > { %921 = vadd.xlane.f32.xlu1 %v915_v35  ;;  %v2136_v36 = vadd.f32 %v896_v34, %v2087_v45  ;;  %v1716_v45 = vld [vmem:[%s494_s28] sm:$0xff]  }
 0x297   : > { %1580 = vmatprep.subr.bf16.mxu1 %v1716_v45 }
 0x298   : > { %907 = vadd.xlane.f32.xlu0 %v2136_v36  ;;  %v916_v37 = vmul.f32 %v2136_v36, %v2136_v36  ;;  %1581 = vmatpush3.bf16.msra.mxu1 %v1716_v45  ;;  %v1723_v45 = vld [vmem:[%s512_s20 + $0x8] sm:$0xff]  }
 0x29c   : > { %923 = vadd.xlane.f32.xlu0 %v916_v37 }
 0x30d   : > { %v902_v46 = vpop.xlane.xlu0 %901 }
 0x30e   : > { %v909_v47 = vmul.f32 0.03125, %v902_v46  ;;  %v1724_v46 = vld [vmem:[%s512_s20] sm:$0xff]  }
 0x30f   : > { %v918_v48 = vpop.xlane.xlu1 %917 }
 0x310   : > { %v929_v49 = vmul.f32 %v909_v47, %v909_v47  ;;  %v925_v50 = vmul.f32 0.03125, %v918_v48  ;;  %v937_v9 = vsub.f32 %v2118_v13, %v909_v47  ;;  %v964_v13 = vrot.slane %v2153_v7, %v963_v14 }
 0x311   : > { %v973_v47 = vsub.s32 4, %v2145_v62 }
 0x312   : > { %v933_v51 = vsub.f32 %v925_v50, %v929_v49 }
 0x313   : > { %v904_v52 = vpop.xlane.xlu1 %903  ;;  %v920_v53 = vpop.xlane.xlu0 %919  ;;  %v974_v48 = vrot.slane %v2153_v7, %v973_v47 }
 0x314   : > { %v941_v54 = vadd.f32 1e-05, %v933_v51  ;;  %v910_v55 = vmul.f32 0.03125, %v904_v52  ;;  %v926_v57 = vmul.f32 0.03125, %v920_v53 }
 0x316   : > { %1725 = vrsqrt.f32 %v941_v54  ;;  %v930_v56 = vmul.f32 %v910_v55, %v910_v55  ;;  %v938_v18 = vsub.f32 %v2124_v19, %v910_v55 }
 0x318   : > { %v934_v58 = vsub.f32 %v926_v57, %v930_v56 }
 0x31a   : > { %v942_v60 = vadd.f32 1e-05, %v934_v58 }
 0x31c   : > { %1727 = vrsqrt.f32 %v942_v60 }
 0x31d   : > { %v906_v61 = vpop.xlane.xlu0 %905 }
 0x31e   : > { %v911_v63 = vmul.f32 0.03125, %v906_v61 }
 0x31f   : > { %v922_v0 = vpop.xlane.xlu1 %921 }
 0x320   : > { %v931_v1 = vmul.f32 %v911_v63, %v911_v63  ;;  %v927_v2 = vmul.f32 0.03125, %v922_v0  ;;  %v939_v19 = vsub.f32 %v2130_v31, %v911_v63  ;;  %v1718_v31 = vld [vmem:[%s512_s20 + $0x30] sm:$0xff]  }
 0x321   : > { %v908_v3 = vpop.xlane.xlu0 %907  ;;  %1588 = vmatprep.subr.bf16.mxu0 %v1718_v31 }
 0x322   : > { %v935_v5 = vsub.f32 %v927_v2, %v931_v1  ;;  %v912_v6 = vmul.f32 0.03125, %v908_v3  ;;  %1589 = vmatpush3.bf16.msra.mxu0 %v1718_v31 }
 0x323   : > { %v1726_v8 = vpop.eup %1725 }
 0x324   : > { %v943_v10 = vadd.f32 1e-05, %v935_v5  ;;  %v932_v15 = vmul.f32 %v912_v6, %v912_v6  ;;  %v949_v17 = vmul.f32 %v1726_v8, %v937_v9  ;;  %v940_v32 = vsub.f32 %v2136_v36, %v912_v6  ;;  %v1719_v36 = vld [vmem:[%s512_s20 + $0x28] sm:$0xff]  }
 0x325   : > { %v924_v11 = vpop.xlane.xlu0 %923  ;;  %1590 = vmatprep.subr.bf16.mxu0 %v1719_v36 }
 0x326   : > { %1729 = vrsqrt.f32 %v943_v10  ;;  %v928_v16 = vmul.f32 0.03125, %v924_v11  ;;  %v957_v24 = vmul.f32 %v956_v12, %v949_v17  ;;  %1591 = vmatpush3.bf16.msra.mxu0 %v1719_v36 }
 0x327   : > { %1592 = vmatprep.subr.bf16.mxu0 %v1720_v42 }
 0x328   : > { %v936_v20 = vsub.f32 %v928_v16, %v932_v15  ;;  %v2161_v26 = vadd.f32 %v964_v13, %v957_v24 }
 0x329   : > { %v1728_v21 = vpop.eup %1727 }
 0x32a   : > { %v944_v22 = vadd.f32 1e-05, %v936_v20  ;;  %v950_v23 = vmul.f32 %v1728_v21, %v938_v18  ;;  %1593 = vmatpush3.bf16.msra.mxu0 %v1720_v42 }
 0x32b   : > { %1594 = vmatprep.subr.bf16.mxu0 %v1721_v43 }
 0x32c   : > { %1731 = vrsqrt.f32 %v944_v22  ;;  %v958_v25 = vmul.f32 %v956_v12, %v950_v23 }
 0x32e   : > { %v2163_v27 = vadd.f32 %v964_v13, %v958_v25  ;;  %1595 = vmatpush3.bf16.msra.mxu0 %v1721_v43 }
 0x32f   : > { %1596 = vmatprep.subr.bf16.mxu0 %v1722_v44 }
 0x330   : > { %v969_v28 = vpack.c.bf16 %v2163_v27, %v2161_v26 }
 0x332   : > { %1582 = vmatprep.mubr.bf16.mxu1 %v969_v28  ;;  %1597 = vmatpush3.bf16.msra.mxu0 %v1722_v44 }
 0x333   : > { %v1730_v29 = vpop.eup %1729  ;;  %1598 = vmatprep.subr.bf16.mxu0 %v1723_v45 }
 0x334   : > { %v951_v30 = vmul.f32 %v1730_v29, %v939_v19 }
 0x336   : > { %v959_v35 = vmul.f32 %v956_v12, %v951_v30  ;;  %1599 = vmatpush3.bf16.msra.mxu0 %v1723_v45 }
 0x337   : > { %1600 = vmatprep.subr.bf16.mxu0 %v1724_v46 }
 0x338   : > { %v2169_v38 = vadd.f32 %v964_v13, %v959_v35 }
 0x339   : > { %v1732_v33 = vpop.eup %1731 }
 0x33a   : > { %v952_v34 = vmul.f32 %v1732_v33, %v940_v32  ;;  %1601 = vmatpush3.bf16.msra.mxu0 %v1724_v46 }
 0x33c   : > { %v960_v37 = vmul.f32 %v956_v12, %v952_v34 }
 0x33e   : > { %v2171_v39 = vadd.f32 %v964_v13, %v960_v37 }
 0x340   : > { %v970_v40 = vpack.c.bf16 %v2171_v39, %v2169_v38 }
 0x342   : > { %1583 = vmatmul.mubr.bf16.vlgmr.msra.gmra.mxu1 %v970_v40  ;;  %v1112_v40 = vsub.s32 5, %v2145_v62 }
 0x344   : > { %v1113_v41 = vrot.slane %v2153_v7, %v1112_v40 }
 0x402   : > { %v1584_v49 = vpop.f32.mrf.mxu1 }
 0x403   : > { %v1066_v50 = vadd.f32 %v1584_v49, %v974_v48 }
 0x404   : > { %v1057_v51 = vpop.f32.mrf.mxu1 }
 0x405   : > { %v1078_v52 = vmul.f32 0.044715, %v1066_v50  ;;  %v1058_v53 = vadd.f32 %v1057_v51, %v974_v48  ;;  %v1074_v19 = vmul.f32 0.5, %v1066_v50 }
 0x406   : > { %v1585_v54 = vpop.f32.mrf.mxu1 }
 0x407   : > { %v1082_v55 = vmul.f32 %v1078_v52, %v1066_v50  ;;  %v1076_v56 = vmul.f32 0.044715, %v1058_v53  ;;  %v1069_v57 = vadd.f32 %v1585_v54, %v974_v48  ;;  %v1072_v25 = vmul.f32 0.5, %v1058_v53 }
 0x408   : > { %v1060_v58 = vpop.f32.mrf.mxu1 }
 0x409   : > { %v1086_v59 = vmul.f32 %v1082_v55, %v1066_v50  ;;  %v1080_v60 = vmul.f32 %v1076_v56, %v1058_v53  ;;  %v1079_v61 = vmul.f32 0.044715, %v1069_v57  ;;  %v1061_v63 = vadd.f32 %v1060_v58, %v974_v48 }
 0x40a   : > { %v1075_v24 = vmul.f32 0.5, %v1069_v57 }
 0x40b   : > { %v1090_v0 = vadd.f32 %v1086_v59, %v1066_v50  ;;  %v1084_v1 = vmul.f32 %v1080_v60, %v1058_v53  ;;  %v1083_v2 = vmul.f32 %v1079_v61, %v1069_v57  ;;  %v1077_v3 = vmul.f32 0.044715, %v1061_v63 }
 0x40c   : > { %v1073_v28 = vmul.f32 0.5, %v1061_v63 }
 0x40d   : > { %v1094_v5 = vmul.f32 0.7978846, %v1090_v0  ;;  %v1087_v6 = vmul.f32 %v1083_v2, %v1069_v57  ;;  %v1088_v8 = vadd.f32 %v1084_v1, %v1058_v53  ;;  %v1081_v9 = vmul.f32 %v1077_v3, %v1061_v63 }
 0x40f   : > { %v1091_v10 = vadd.f32 %v1087_v6, %v1069_v57  ;;  %v1092_v11 = vmul.f32 0.7978846, %v1088_v8  ;;  %v1085_v12 = vmul.f32 %v1081_v9, %v1061_v63  ;;  %1733 = vtanh.f32 %v1094_v5 }
 0x411   : > { %v1095_v14 = vmul.f32 0.7978846, %v1091_v10  ;;  %v1089_v15 = vadd.f32 %v1085_v12, %v1061_v63  ;;  %1735 = vtanh.f32 %v1092_v11 }
 0x413   : > { %1737 = vtanh.f32 %v1095_v14  ;;  %v1093_v16 = vmul.f32 0.7978846, %v1089_v15 }
 0x415   : > { %1739 = vtanh.f32 %v1093_v16 }
 0x41c   : > { %v1734_v17 = vpop.eup %1733 }
 0x41d   : > { %v1102_v13 = vadd.f32 1.0, %v1734_v17 }
 0x41e   : > { %v1736_v18 = vpop.eup %1735 }
 0x41f   : > { %v1100_v22 = vadd.f32 1.0, %v1736_v18  ;;  %v1106_v34 = vmul.f32 %v1102_v13, %v1074_v19 }
 0x420   : > { %v1738_v20 = vpop.eup %1737 }
 0x421   : > { %v1103_v21 = vadd.f32 1.0, %v1738_v20  ;;  %v1104_v32 = vmul.f32 %v1100_v22, %v1072_v25  ;;  %v1277_v22 = vsub.s32 3, %v2145_v62 }
 0x422   : > { %v1740_v23 = vpop.eup %1739 }
 0x423   : > { %v1101_v29 = vadd.f32 1.0, %v1740_v23  ;;  %v1107_v30 = vmul.f32 %v1103_v21, %v1075_v24  ;;  %v1269_v21 = vsub.s32 2, %v2145_v62  ;;  %v1278_v25 = vrot.slane %v2153_v7, %v1277_v22 }
 0x425   : > { %v1105_v33 = vmul.f32 %v1101_v29, %v1073_v28  ;;  %v1109_v37 = vpack.c.bf16 %v1107_v30, %v1106_v34  ;;  %v1270_v24 = vrot.slane %v2153_v7, %v1269_v21 }
 0x427   : > { %v1108_v35 = vpack.c.bf16 %v1105_v33, %v1104_v32 }
 0x429   : > { %1602 = vmatprep.mubr.bf16.mxu0 %v1108_v35 }
 0x42a   : > { %1603 = vmatmul.mubr.bf16.vlgmr.msra.gmra.mxu0 %v1109_v37 }
 0x4ea   : > { %v1604_v31 = vpop.f32.mrf.mxu0 }
 0x4eb   : > { %v1205_v36 = vadd.f32 %v1604_v31, %v1113_v41 }
 0x4ec   : > { %v1196_v42 = vpop.f32.mrf.mxu0 }
 0x4ed   : > { %v2182_v43 = vadd.f32 %v1205_v36, %v2169_v38  ;;  %v1197_v44 = vadd.f32 %v1196_v42, %v1113_v41 }
 0x4ee   : > { %v1605_v45 = vpop.f32.mrf.mxu0 }
 0x4ef   : > { %v1208_v46 = vadd.f32 %v1605_v45, %v1113_v41  ;;  %1219 = vadd.xlane.f32.xlu1 %v2182_v43  ;;  %v1211_v48 = vadd.f32 %v1197_v44, %v2161_v26  ;;  %v1229_v53 = vmul.f32 %v2182_v43, %v2182_v43 }
 0x4f0   : > { %v1199_v47 = vpop.f32.mrf.mxu0 }
 0x4f1   : > { %v2187_v49 = vadd.f32 %v1208_v46, %v2171_v39  ;;  %v1200_v50 = vadd.f32 %v1199_v47, %v1113_v41  ;;  %v1227_v52 = vmul.f32 %v1211_v48, %v1211_v48 }
 0x4f3   : > { %1221 = vadd.xlane.f32.xlu0 %v2187_v49  ;;  %1215 = vadd.xlane.f32.xlu1 %v1211_v48  ;;  %v1212_v51 = vadd.f32 %v1200_v50, %v2163_v27  ;;  %v1230_v26 = vmul.f32 %v2187_v49, %v2187_v49 }
 0x4f5   : > { %v1228_v38 = vmul.f32 %v1212_v51, %v1212_v51 }
 0x4f7   : > { %1217 = vadd.xlane.f32.xlu0 %v1212_v51  ;;  %1231 = vadd.xlane.f32.xlu1 %v1227_v52 }
 0x4fb   : > { %1233 = vadd.xlane.f32.xlu0 %v1228_v38  ;;  %1235 = vadd.xlane.f32.xlu1 %v1229_v53 }
 0x4ff   : > { %1237 = vadd.xlane.f32.xlu0 %v1230_v26 }
 0x578   : > { %v1220_v39 = vpop.xlane.xlu1 %1219 }
 0x579   : > { %v1225_v57 = vmul.f32 0.03125, %v1220_v39 }
 0x57b   : > { %v1245_v0 = vmul.f32 %v1225_v57, %v1225_v57  ;;  %v1253_v32 = vsub.f32 %v2182_v43, %v1225_v57 }
 0x57c   : > { %v1222_v54 = vpop.xlane.xlu0 %1221  ;;  %v1216_v55 = vpop.xlane.xlu1 %1215 }
 0x57d   : > { %v1223_v56 = vmul.f32 0.03125, %v1216_v55  ;;  %v1226_v1 = vmul.f32 0.03125, %v1222_v54 }
 0x57f   : > { %v1243_v59 = vmul.f32 %v1223_v56, %v1223_v56  ;;  %v1246_v14 = vmul.f32 %v1226_v1, %v1226_v1  ;;  %v1251_v23 = vsub.f32 %v1211_v48, %v1223_v56  ;;  %v1254_v40 = vsub.f32 %v2187_v49, %v1226_v1 }
 0x580   : > { %v1218_v58 = vpop.xlane.xlu0 %1217  ;;  %v1232_v27 = vpop.xlane.xlu1 %1231 }
 0x581   : > { %v1224_v60 = vmul.f32 0.03125, %v1218_v58  ;;  %v1239_v61 = vmul.f32 0.03125, %v1232_v27 }
 0x583   : > { %v1247_v63 = vsub.f32 %v1239_v61, %v1243_v59  ;;  %v1244_v5 = vmul.f32 %v1224_v60, %v1224_v60  ;;  %v1252_v29 = vsub.f32 %v1212_v51, %v1224_v60 }
 0x584   : > { %v1234_v2 = vpop.xlane.xlu0 %1233  ;;  %v1236_v3 = vpop.xlane.xlu1 %1235 }
 0x585   : > { %v1255_v6 = vadd.f32 1e-05, %v1247_v63  ;;  %v1240_v8 = vmul.f32 0.03125, %v1234_v2  ;;  %v1241_v9 = vmul.f32 0.03125, %v1236_v3 }
 0x587   : > { %1741 = vrsqrt.f32 %v1255_v6  ;;  %v1248_v10 = vsub.f32 %v1240_v8, %v1244_v5  ;;  %v1249_v11 = vsub.f32 %v1241_v9, %v1245_v0 }
 0x588   : > { %v1238_v12 = vpop.xlane.xlu0 %1237 }
 0x589   : > { %v1256_v15 = vadd.f32 1e-05, %v1248_v10  ;;  %v1257_v16 = vadd.f32 1e-05, %v1249_v11  ;;  %v1242_v17 = vmul.f32 0.03125, %v1238_v12 }
 0x58b   : > { %1743 = vrsqrt.f32 %v1256_v15  ;;  %v1250_v18 = vsub.f32 %v1242_v17, %v1246_v14 }
 0x58c   : > { %1745 = vrsqrt.f32 %v1257_v16 }
 0x58d   : > { %v1258_v20 = vadd.f32 1e-05, %v1250_v18 }
 0x58f   : > { %1747 = vrsqrt.f32 %v1258_v20 }
 0x594   : > { %v1742_v13 = vpop.eup %1741 }
 0x595   : > { %v1263_v28 = vmul.f32 %v1742_v13, %v1251_v23 }
 0x597   : > { %v1271_v19 = vmul.f32 %v1270_v24, %v1263_v28 }
 0x598   : > { %v1744_v30 = vpop.eup %1743 }
 0x599   : > { %v1746_v33 = vpop.eup %1745  ;;  %v1279_v34 = vadd.f32 %v1278_v25, %v1271_v19  ;;  %v1264_v35 = vmul.f32 %v1744_v30, %v1252_v29 }
 0x59a   : > { %v1265_v37 = vmul.f32 %v1746_v33, %v1253_v32 }
 0x59b   : > { %v1272_v41 = vmul.f32 %v1270_v24, %v1264_v35 }
 0x59c   : > { %v1748_v62 = vpop.eup %1747  ;;  %v1273_v31 = vmul.f32 %v1270_v24, %v1265_v37 }
 0x59d   : > { %v1280_v36 = vadd.f32 %v1278_v25, %v1272_v41  ;;  %v1266_v42 = vmul.f32 %v1748_v62, %v1254_v40  ;;  %1286 = sbr.rel (%p1506_p2) target bundleno = 1444 (0x5a4), region = 80 }
 0x59e   : > { %v1281_v44 = vadd.f32 %v1278_v25, %v1273_v31 }
 0x59f   : > { %v1274_v45 = vmul.f32 %v1270_v24, %v1266_v42 }
 0x5a1   : > { %v1282_v7 = vadd.f32 %v1278_v25, %v1274_v45 }
 0x5a2   : > { %1287 = vst [vmem:[#allocation2 + $0x10] sm:$0xff] %v1279_v34  ;;  %1288 = vst [vmem:[#allocation2] sm:$0xff] %v1280_v36 }
 0x5a3   : > { %1289 = vst [vmem:[#allocation2 + $0x18] sm:$0xff] %v1281_v44  ;;  %1290 = vst [vmem:[#allocation2 + $0x8] sm:$0xff] %v1282_v7 }
 0x5a4 PF: > { %p1507_p3 = scmp.ne.s32.totalorder %s1878_s15, 1 }
 0x5a6   : > { %1294 = sbr.rel (%p1507_p3) target bundleno = 1588 (0x634), region = 84 }
 0x5ab   : > { %v1295_v43 = vld [vmem:[#allocation3] sm:$0x1]  ;;  %v1899_v46 = vmov 0   ;;  %v1297_v52 = vld [vmem:[%s2243_s0 + $0x8] sm:$0xff]  ;;  %v1298_v38 = vld [vmem:[%s2243_s0 + $0x10] sm:$0xff] }
 0x5ac   : > { %1749 = vset.pattern.permute.xlu0 %v1899_v46  ;;  %v1304_v47 = vrot.slane %v1295_v43, %v2151_v4  ;;  %v1313_v48 = vsub.f32 1.0, %v1295_v43  ;;  %v1296_v50 = vld [vmem:[%s2243_s0] sm:$0xff]  ;;  %v1299_v53 = vld [vmem:[%s2243_s0 + $0x18] sm:$0xff] }
 0x5ae   : > { %1306 = vperm.xlu0 %1749, %v1304_v47   ;;  %v1318_v49 = vrot.slane %v1313_v48, %v2151_v4 }
 0x5b2   : > { %1320 = vperm.xlu0 %1749, %v1318_v49  }
 0x629   : > { %v1307_v51 = vpop.permute.xlu0 %1306 }
 0x62a   : > { %v1309_v26 = vmul.f32 %v1307_v51, %v1296_v50  ;;  %v1310_v4 = vmul.f32 %v1307_v51, %v1297_v52  ;;  %v1311_v39 = vmul.f32 %v1307_v51, %v1298_v38  ;;  %v1312_v54 = vmul.f32 %v1307_v51, %v1299_v53 }
 0x62d   : > { %v1321_v55 = vpop.permute.xlu0 %1320 }
 0x62e   : > { %v1323_v56 = vmul.f32 %v1321_v55, %v1279_v34  ;;  %v1324_v57 = vmul.f32 %v1321_v55, %v1280_v36  ;;  %v1325_v58 = vmul.f32 %v1321_v55, %v1281_v44  ;;  %v1326_v27 = vmul.f32 %v1321_v55, %v1282_v7 }
 0x630   : > { %v1327_v59 = vadd.f32 %v1323_v56, %v1309_v26  ;;  %v1328_v60 = vadd.f32 %v1324_v57, %v1310_v4  ;;  %v1329_v61 = vadd.f32 %v1325_v58, %v1311_v39  ;;  %v1330_v63 = vadd.f32 %v1326_v27, %v1312_v54 }
 0x632   : > { %1331 = vst [vmem:[#allocation10] sm:$0xff] %v1327_v59  ;;  %1332 = vst [vmem:[#allocation10 + $0x8] sm:$0xff] %v1328_v60 }
 0x633   : > { %1333 = vst [vmem:[#allocation10 + $0x10] sm:$0xff] %v1329_v61  ;;  %1334 = vst [vmem:[#allocation10 + $0x18] sm:$0xff] %v1330_v63 }
 0x634 PF: > { %p2219_p5 = scmp.eq.s32.totalorder %s1452_s19, 1  ;;  %s1900_s30 = smov [#allocation10]  }
 0x635   : > { %s1344_s22 = sshll.u32 %s1900_s30, 4  ;;  %s1345_s22 = int_to_ptr.vmem [resolvable:$true] %s1344_s22 }
 0x636   : > { %s1828_s28 = scalar_lea.vmem %s1345_s22, 512  ;;  %p1835_p6 = scmp.lt.s32.totalorder %s1345_s22, %s1345_s22 }
 0x637   : > { %p1829_p10 = scmp.ne.s32.totalorder %s1345_s22, %s1828_s28  ;;  %p1836_p13 = scmp.lt.s32.totalorder %s1828_s28, %s1828_s28 }
 0x639   : > { %p1830_p11 = pnand %p1829_p10, %p2219_p5  ;;  %p1837_p0 = por %p1836_p13, %p1835_p6 }
 0x63b   : > { %p1831_p12 = pneg %p1830_p11 }
 0x63d   : > { %p1838_p1 = pnand %p1837_p0, %p1831_p12 }
 0x63f   : > { %1841 = shalt.err (!%p1838_p1)
}
 0x640   : > { %s1901_s21 = smov 128   ;;  %s1902_s19 = smov 8  }
 0x641   : > { %1619 = dma.vmem_to_hbm [thread:$0]  (%p2219_p5), %s1345_s22, 512, %s2253_s10, [#allocation6], %s1901_s21, %s1901_s21, %s1902_s19  }
 0x642   : > { %1873 = dma.done.wait (%p2219_p5), [#allocation6], 512  }
 0x643   : > { %1875 = vsyncadd (%p2219_p5), [#allocation6], 4294966784 }
 0x644 PF: > { %s25_s17 = sadd.s32 1, %s1886_s17   ;;  %s2259_s15 = smov %s1882_s16 }
 0x645   : > { %p22_p4 = scmp.ge.s32.totalorder %s25_s17, 4   ;;  %s2260_s16 = smov %s2262_s23 }
 0x647   :  { %24 = sbr.rel (!%p22_p4) target bundleno = 7 (0x7), region = 119 }
 0x64c   :  { %1360 = vsyncpa [#allocation5], 1 }
 0x64d   :  { %1362 = vsyncpa [#allocation5 + $0x1], 1 }
 0x64e   :  { %1363 = vsyncpa [#allocation8], 1 }
 0x64f   :  { %1364 = vsyncpa [#allocation6], 1 }
 0x650   :  { %1366 = vsyncpa [#allocation6 + $0x1], 1 }

// kernel: contextualization_forward.2
= control target key start
LH: loop header
LB: loop body
LE: loop exit
PB: predicated region body
PF: predicated region fallthrough
CT: control target
= control target key end

     0   :  { %s1792_s0 = inlined_call_operand.vmem [shape: f32[16,128], index: 0, kind: input, shape index: {}]   ;;  %s1793_s1 = inlined_call_operand.vmem [shape: f32[16,1], index: 1, kind: input, shape index: {}]   ;;  %s1794_s2 = inlined_call_operand.vmem [shape: f32[8,128], index: 2, kind: input, shape index: {}]   ;;  %s1795_s3 = inlined_call_operand.vmem [shape: bf16[128,256], index: 3, kind: input, shape index: {}]   ;;  %s1796_s4 = inlined_call_operand.vmem [shape: bf16[8,8], index: 4, kind: input, shape index: {}]   ;;  %s1797_s5 = inlined_call_operand.vmem [shape: bf16[8,8], index: 5, kind: input, shape index: {}]   ;;  %s1798_s6 = inlined_call_operand.vmem [shape: f32[2,8,128], index: 6, kind: input, shape index: {}]   ;;  %s1799_s7 = inlined_call_operand.vmem [shape: bf16[2,128,128], index: 7, kind: input, shape index: {}]   ;;  %s1800_s8 = inlined_call_operand.vmem [shape: bf16[2,128,128], index: 8, kind: input, shape index: {}]   ;;  %s1801_s9 = inlined_call_operand.<no memory space> [shape: f32[1,1], index: 9, kind: input, shape index: {}]   ;;  %s1802_s10 = inlined_call_operand.hbm [shape: f32[16,128], index: 10, kind: output, shape index: {}]  }
   0x1   :  { %v15_v0 = vstv %s1801_s9 }
   0x2   :  { %16 = vst [vmem:[#allocation3] sm:$0x1] %v15_v0 }
   0x3   :  { %17 = vsyncpa [#allocation5], 0  ;;  %s1567_s15 = smov 0   ;;  %s1569_s16 = smov 0  }
   0x4   :  { %s1571_s17 = smov 0  }
   0x5 LB: > { %s1212_s9 = sadd.s32 4294967295, %s1499_s17   ;;  %s32_s18 = sadd.s32 1, %s1495_s16  ;;  %s1499_s17 = sphi %s1571_s17, %s23_s17   ;;  %s1495_s16 = sphi %s1569_s16, %s1805_s16   ;;  %s1491_s15 = sphi %s1567_s15, %s1804_s15  }
   0x6   : > { %p33_p0 = scmp.ge.s32.totalorder %s32_s18, 2  ;;  %p1216_p1 = scmp.ge.s32.totalorder %s1499_s17, 1 }
   0x7   : > { %p339_p2 = scmp.lt.s32.totalorder %s1499_s17, 3 }
   0x8   : > { %s1807_s18 = smov (%p33_p0, %s32_s18), 0 }
   0x9   : > { %p340_p3 = pnand %p1216_p1, %p339_p2 }
   0xa   : > { %p1217_p4 = scmp.ne.s32.totalorder (!%p340_p3), %s1491_s15, 0 }
   0xb   : > { %343 = sbr.rel (%p340_p3) target bundleno = 1542 (0x606), region = 60 }
  0x10   : > { %394 = sbr.rel (%p1217_p4) target bundleno = 154 (0x9a), region = 64 }
  0x15   : > { %v398_v1 = vld [vmem:[%s1793_s1] sm:$0xff]  ;;  %v1501_v2 = vmov 0   ;;  %v408_v3 = vld [vmem:[%s1793_s1 + $0x8] sm:$0xff] }
  0x16   : > { %1394 = vset.pattern.permute.xlu0 %v1501_v2  ;;  %v395_v4 = vld [vmem:[%s1794_s2] sm:$0xff]  ;;  %v406_v7 = vld [vmem:[%s1792_s0 + $0x8] sm:$0xff] }
  0x17   : > { %401 = vperm.xlu0 %1394, %v398_v1   ;;  %v396_v5 = vld [vmem:[%s1792_s0] sm:$0xff]  ;;  %v407_v10 = vadd.f32 %v406_v7, %v395_v4 }
  0x18   : > { %v397_v6 = vadd.f32 %v396_v5, %v395_v4 }
  0x1b   : > { %411 = vperm.xlu0 %1394, %v408_v3  }
  0x92   : > { %v402_v8 = vpop.permute.xlu0 %401 }
  0x93   : > { %v404_v9 = vmul.f32 %v402_v8, %v397_v6 }
  0x95   : > { %405 = vst [vmem:[#allocation2] sm:$0xff] %v404_v9 }
  0x96   : > { %v412_v11 = vpop.permute.xlu0 %411 }
  0x97   : > { %v414_v12 = vmul.f32 %v412_v11, %v407_v10 }
  0x99   : > { %415 = vst [vmem:[#allocation2 + $0x8] sm:$0xff] %v414_v12 }
  0x9a PF: > { %v1396_v13 = vld [vmem:[%s1795_s3 + $0x74] ss:$8 sps:$4 sm:$0xff]   ;;  %v1398_v14 = vld [vmem:[%s1795_s3 + $0x70] ss:$8 sps:$4 sm:$0xff]   ;;  %v1502_v15 = vmov 0   ;;  %v1503_v33 = vmov 0.0  }
  0x9b   : > { %589 = vmatprep.mubr.bf16.mxu0 %v1502_v15  ;;  %1395 = vset.pattern.permute.xlu0 %v1502_v15  ;;  %v1399_v16 = vld [vmem:[%s1795_s3 + $0x64] ss:$8 sps:$4 sm:$0xff]   ;;  %v1401_v17 = vld [vmem:[%s1795_s3 + $0x60] ss:$8 sps:$4 sm:$0xff]   ;;  %v1402_v18 = vld [vmem:[%s1795_s3 + $0x54] ss:$8 sps:$4 sm:$0xff]  }
  0x9c   : > { %557 = vmatprep.subr.bf16.mxu0 %v1396_v13  ;;  %v1404_v19 = vld [vmem:[%s1795_s3 + $0x50] ss:$8 sps:$4 sm:$0xff]   ;;  %v1405_v20 = vld [vmem:[%s1795_s3 + $0x44] ss:$8 sps:$4 sm:$0xff]   ;;  %v1407_v21 = vld [vmem:[%s1795_s3 + $0x40] ss:$8 sps:$4 sm:$0xff]   ;;  %1292 = vmatprep.subr.bf16.mxu1 %v1503_v33 }
  0x9d   : > { %558 = vmatpush1.bf16.msra.mxu0 %v1398_v14  ;;  %v1408_v22 = vld [vmem:[%s1795_s3 + $0x34] ss:$8 sps:$4 sm:$0xff]   ;;  %v1410_v23 = vld [vmem:[%s1795_s3 + $0x30] ss:$8 sps:$4 sm:$0xff]   ;;  %v1411_v24 = vld [vmem:[%s1795_s3 + $0x24] ss:$8 sps:$4 sm:$0xff]  }
  0x9e   : > { %559 = vmatprep.subr.bf16.mxu0 %v1399_v16  ;;  %v1413_v25 = vld [vmem:[%s1795_s3 + $0x20] ss:$8 sps:$4 sm:$0xff]   ;;  %v1414_v26 = vld [vmem:[%s1795_s3 + $0x14] ss:$8 sps:$4 sm:$0xff]   ;;  %v1416_v27 = vld [vmem:[%s1795_s3 + $0x10] ss:$8 sps:$4 sm:$0xff]  }
  0x9f   : > { %v1417_v28 = vld [vmem:[%s1795_s3 + $0x4] ss:$8 sps:$4 sm:$0xff]   ;;  %v1419_v29 = vld [vmem:[%s1795_s3] ss:$8 sps:$4 sm:$0xff]   ;;  %vm1504_vm0 = vmmov 0   ;;  %vm608_vm1 = vcmask 1043456  }
  0xa0   : > { %v416_v30 = vld [vmem:[#allocation2] sm:$0xff]  ;;  %v1652_v31 = vld [vmem:[#allocation2 + $0x8] sm:$0xff]  ;;  %1294 = vmatprep.mubr.msk.bf16.mxu1 %vm1504_vm0, %v1503_v33  ;;  %vm604_vm2 = vcmask 64512   ;;  %s1264_s21 = sshll.u32 %s1491_s15, 6  ;;  %s1218_s25 = sshll.u32 %s1491_s15, 3 }
  0xa1   : > { %560 = vmatpush1.bf16.msra.mxu0 %v1401_v17  ;;  %v460_v32 = vpack.c.bf16 %v1652_v31, %v416_v30  ;;  %v418_v34 = vld [vmem:[%s1793_s1] sm:$0xff]  ;;  %v419_v35 = vld [vmem:[%s1793_s1 + $0x8] sm:$0xff]  ;;  %s425_s24 = scalar_lea.vmem %s1799_s7, %s1264_s21  ;;  %s421_s28 = scalar_lea.vmem %s1798_s6, %s1218_s25 }
  0xa2   : > { %561 = vmatprep.subr.bf16.mxu0 %v1402_v18  ;;  %790 = vperm.xlu0 %1395, %v418_v34   ;;  %v600_v41 = vld [vmem:[%s1796_s4] sm:$0xf]  ;;  %v1420_v12 = vld [vmem:[%s425_s24 + $0x38] sm:$0xff]   ;;  %v1421_v13 = vld [vmem:[%s425_s24 + $0x30] sm:$0xff]   ;;  %s443_s11 = scalar_lea.vmem %s1800_s8, %s1264_s21  ;;  %p1258_p5 = scmp.ge.s32.totalorder %s1491_s15, 1 }
  0xa3   : > { %v601_v45 = vld [vmem:[%s1797_s5] sm:$0xf]  ;;  %v1422_v14 = vld [vmem:[%s425_s24 + $0x28] sm:$0xff]   ;;  %v1424_v16 = vld [vmem:[%s425_s24 + $0x18] sm:$0xff]  }
  0xa4   : > { %v1423_v15 = vld [vmem:[%s425_s24 + $0x20] sm:$0xff]   ;;  %v1425_v17 = vld [vmem:[%s425_s24 + $0x10] sm:$0xff]   ;;  %v1426_v18 = vld [vmem:[%s425_s24 + $0x8] sm:$0xff]  }
  0xa5   : > { %562 = vmatpush1.bf16.msra.mxu0 %v1404_v19  ;;  %v1427_v19 = vld [vmem:[%s425_s24] sm:$0xff]  }
  0xa6   : > { %563 = vmatprep.subr.bf16.mxu0 %v1405_v20  ;;  %795 = vperm.xlu0 %1395, %v419_v35   ;;  %v828_v35 = vlaneseq }
  0xa9   : > { %564 = vmatpush1.bf16.msra.mxu0 %v1407_v21 }
  0xaa   : > { %565 = vmatprep.subr.bf16.mxu0 %v1408_v22 }
  0xad   : > { %566 = vmatpush1.bf16.msra.mxu0 %v1410_v23 }
  0xae   : > { %567 = vmatprep.subr.bf16.mxu0 %v1411_v24 }
  0xb1   : > { %568 = vmatpush1.bf16.msra.mxu0 %v1413_v25 }
  0xb2   : > { %569 = vmatprep.subr.bf16.mxu0 %v1414_v26 }
  0xb5   : > { %570 = vmatpush1.bf16.msra.mxu0 %v1416_v27 }
  0xb6   : > { %571 = vmatprep.subr.bf16.mxu0 %v1417_v28 }
  0xb9   : > { %572 = vmatpush1.bf16.msra.mxu0 %v1419_v29 }
  0xba   : > { %1336 = vmatprep.subr.bf16.mxu0 %v1503_v33 }
  0xbc   : > { %590 = vmatmul.mubr.bf16.vlgmr.msra.gmra.mxu0 %v460_v32 }
  0xbd   : > { %1352 = vmatprep.mubr.msk.bf16.mxu0 %vm1504_vm0, %v1503_v33 }
 0x11d   : > { %v791_v55 = vpop.permute.xlu0 %790 }
 0x121   : > { %v796_v5 = vpop.permute.xlu0 %795 }
 0x17c   : > { %v591_v36 = vpop.f32.mrf.mxu0 }
 0x17d   : > { %v602_v37 = vpack.c.bf16 %v591_v36, %v591_v36  ;;  %v1713_v36 = vshrl.u32 %v828_v35, 7 }
 0x17e   : > { %v593_v38 = vpop.f32.mrf.mxu0 }
 0x17f   : > { %v603_v39 = vpack.c.bf16 %v593_v38, %v593_v38  ;;  %v610_v40 = vsel %vm608_vm1, %v602_v37, 0  ;;  %v1719_v37 = vsub.s32 0, %v1713_v36 }
 0x180   : > { %1293 = vmatpush3.bf16.msra.mxu1 %v610_v40  ;;  %v595_v43 = vpop.f32.mrf.mxu0 }
 0x181   : > { %1298 = vmatprep.subr.bf16.mxu1 %v1503_v33  ;;  %v656_v42 = vsel %vm608_vm1, %v603_v39, 0  ;;  %v699_v44 = vpack.c.bf16 %v595_v43, %v595_v43  ;;  %v1721_v39 = vld [vmem:[%s421_s28] sm:$0xff]  ;;  %v836_v43 = vsub.s32 1, %v1713_v36 }
 0x182   : > { %v597_v47 = vpop.f32.mrf.mxu0 }
 0x183   : > { %1295 = vmatmul.mubr.msk.bf16.vlgmr.msra.gmra.mxu1 %vm604_vm2, %v600_v41  ;;  %v702_v46 = vsel %vm608_vm1, %v699_v44, 0  ;;  %v700_v48 = vpack.c.bf16 %v597_v47, %v597_v47 }
 0x184   : > { %1299 = vmatpush3.bf16.msra.mxu1 %v656_v42  ;;  %1300 = vmatprep.mubr.msk.bf16.mxu1 %vm1504_vm0, %v1503_v33  ;;  %v831_v42 = vrot.slane %v1721_v39, %v1719_v37 }
 0x185   : > { %1304 = vmatprep.subr.bf16.mxu1 %v1503_v33  ;;  %v745_v49 = vsel %vm608_vm1, %v700_v48, 0  ;;  %v837_v48 = vrot.slane %v1721_v39, %v836_v43 }
 0x18b   : > { %1301 = vmatmul.mubr.msk.bf16.vlgmr.msra.gmra.mxu1 %vm604_vm2, %v601_v45 }
 0x18c   : > { %1305 = vmatpush3.bf16.msra.mxu1 %v702_v46  ;;  %1306 = vmatprep.mubr.msk.bf16.mxu1 %vm1504_vm0, %v1503_v33 }
 0x18d   : > { %1310 = vmatprep.subr.bf16.mxu1 %v1503_v33 }
 0x193   : > { %1307 = vmatmul.mubr.msk.bf16.vlgmr.msra.gmra.mxu1 %vm604_vm2, %v600_v41 }
 0x194   : > { %1311 = vmatpush3.bf16.msra.mxu1 %v745_v49  ;;  %1312 = vmatprep.mubr.msk.bf16.mxu1 %vm1504_vm0, %v1503_v33 }
 0x195   : > { %1316 = vmatprep.subr.bf16.mxu1 %v1503_v33 }
 0x19b   : > { %1313 = vmatmul.mubr.msk.bf16.vlgmr.msra.gmra.mxu1 %vm604_vm2, %v601_v45 }
 0x19c   : > { %1332 = vmatprep.mubr.msk.bf16.mxu1 %vm1504_vm0, %v1503_v33  ;;  %1317 = vmatpush3.bf16.msra.mxu1 %v1420_v12 }
 0x19d   : > { %1318 = vmatprep.subr.bf16.mxu1 %v1503_v33 }
 0x1a0   : > { %1319 = vmatpush3.bf16.msra.mxu1 %v1421_v13 }
 0x1a1   : > { %1320 = vmatprep.subr.bf16.mxu1 %v1503_v33 }
 0x1a4   : > { %1321 = vmatpush3.bf16.msra.mxu1 %v1422_v14 }
 0x1a5   : > { %1322 = vmatprep.subr.bf16.mxu1 %v1503_v33 }
 0x1a8   : > { %1323 = vmatpush3.bf16.msra.mxu1 %v1423_v15 }
 0x1a9   : > { %1324 = vmatprep.subr.bf16.mxu1 %v1503_v33 }
 0x1ac   : > { %1325 = vmatpush3.bf16.msra.mxu1 %v1424_v16 }
 0x1ad   : > { %1326 = vmatprep.subr.bf16.mxu1 %v1503_v33 }
 0x1b0   : > { %1327 = vmatpush3.bf16.msra.mxu1 %v1425_v17 }
 0x1b1   : > { %1328 = vmatprep.subr.bf16.mxu1 %v1503_v33 }
 0x1b4   : > { %1329 = vmatpush3.bf16.msra.mxu1 %v1426_v18 }
 0x1b5   : > { %1330 = vmatprep.subr.bf16.mxu1 %v1503_v33 }
 0x1b8   : > { %1331 = vmatpush3.bf16.msra.mxu1 %v1427_v19 }
 0x243   : > { %v646_v50 = vpop.f32.mrf.mxu1 }
 0x245   : > { %v1296_v51 = vpop.f32.mrf.mxu1 }
 0x247   : > { %v649_v52 = vpop.f32.mrf.mxu1 }
 0x249   : > { %v1297_v53 = vpop.f32.mrf.mxu1 }
 0x24a   : > { %v1428_v53 = vld [vmem:[%s443_s11 + $0x38] sm:$0xff]  }
 0x24b   : > { %v692_v54 = vpop.f32.mrf.mxu1  ;;  %1337 = vmatpush3.bf16.msra.mxu0 %v1428_v53 }
 0x24c   : > { %v698_v56 = vsub.f32 %v646_v50, %v692_v54  ;;  %1338 = vmatprep.subr.bf16.mxu0 %v1503_v33  ;;  %v1429_v54 = vld [vmem:[%s443_s11 + $0x30] sm:$0xff]  }
 0x24d   : > { %v1302_v57 = vpop.f32.mrf.mxu1 }
 0x24e   : > { %v798_v58 = vmul.f32 %v791_v55, %v698_v56  ;;  %v1430_v55 = vld [vmem:[%s443_s11 + $0x28] sm:$0xff]   ;;  %v1431_v56 = vld [vmem:[%s443_s11 + $0x20] sm:$0xff]   ;;  %v1432_v57 = vld [vmem:[%s443_s11 + $0x18] sm:$0xff]  }
 0x24f   : > { %v695_v59 = vpop.f32.mrf.mxu1  ;;  %1339 = vmatpush3.bf16.msra.mxu0 %v1429_v54  ;;  %v1082_v54 = vsub.s32 3, %v1713_v36 }
 0x250   : > { %v1693_v60 = vadd.f32 %v798_v58, %v416_v30  ;;  %1340 = vmatprep.subr.bf16.mxu0 %v1503_v33  ;;  %v1433_v58 = vld [vmem:[%s443_s11 + $0x10] sm:$0xff]   ;;  %v1434_v59 = vld [vmem:[%s443_s11 + $0x8] sm:$0xff]  }
 0x251   : > { %v1303_v61 = vpop.f32.mrf.mxu1 }
 0x252   : > { %802 = vadd.xlane.f32.xlu1 %v1693_v60  ;;  %v808_v62 = vmul.f32 %v1693_v60, %v1693_v60  ;;  %v843_v61 = vsub.s32 4, %v1713_v36 }
 0x253   : > { %v738_v63 = vpop.f32.mrf.mxu1  ;;  %1341 = vmatpush3.bf16.msra.mxu0 %v1430_v55 }
 0x254   : > { %810 = vadd.xlane.f32.xlu0 %v808_v62  ;;  %1342 = vmatprep.subr.bf16.mxu0 %v1503_v33  ;;  %v844_v62 = vrot.slane %v1721_v39, %v843_v61 }
 0x255   : > { %v1308_v0 = vpop.f32.mrf.mxu1 }
 0x257   : > { %v741_v1 = vpop.f32.mrf.mxu1  ;;  %1343 = vmatpush3.bf16.msra.mxu0 %v1431_v56 }
 0x258   : > { %1344 = vmatprep.subr.bf16.mxu0 %v1503_v33 }
 0x259   : > { %v1309_v2 = vpop.f32.mrf.mxu1 }
 0x25b   : > { %v781_v3 = vpop.f32.mrf.mxu1  ;;  %1345 = vmatpush3.bf16.msra.mxu0 %v1432_v57 }
 0x25c   : > { %v787_v4 = vsub.f32 %v738_v63, %v781_v3  ;;  %1346 = vmatprep.subr.bf16.mxu0 %v1503_v33 }
 0x25d   : > { %v1314_v6 = vpop.f32.mrf.mxu1 }
 0x25e   : > { %v799_v7 = vmul.f32 %v796_v5, %v787_v4 }
 0x25f   : > { %v784_v8 = vpop.f32.mrf.mxu1  ;;  %1347 = vmatpush3.bf16.msra.mxu0 %v1433_v58  ;;  %v1083_v58 = vrot.slane %v1721_v39, %v1082_v54 }
 0x260   : > { %v801_v9 = vadd.f32 %v799_v7, %v1652_v31  ;;  %1348 = vmatprep.subr.bf16.mxu0 %v1503_v33 }
 0x261   : > { %v1315_v10 = vpop.f32.mrf.mxu1 }
 0x262   : > { %804 = vadd.xlane.f32.xlu1 %v801_v9  ;;  %v809_v11 = vmul.f32 %v801_v9, %v801_v9 }
 0x263   : > { %1349 = vmatpush3.bf16.msra.mxu0 %v1434_v59 }
 0x264   : > { %1350 = vmatprep.subr.bf16.mxu0 %v1503_v33 }
 0x266   : > { %812 = vadd.xlane.f32.xlu1 %v809_v11 }
 0x2db   : > { %v803_v20 = vpop.xlane.xlu1 %802 }
 0x2dc   : > { %v806_v21 = vmul.f32 0.03125, %v803_v20 }
 0x2dd   : > { %v811_v22 = vpop.xlane.xlu0 %810 }
 0x2de   : > { %v816_v23 = vmul.f32 %v806_v21, %v806_v21  ;;  %v814_v24 = vmul.f32 0.03125, %v811_v22  ;;  %v820_v40 = vsub.f32 %v1693_v60, %v806_v21  ;;  %v1435_v60 = vld [vmem:[%s443_s11] sm:$0xff]  }
 0x2df   : > { %1351 = vmatpush3.bf16.msra.mxu0 %v1435_v60 }
 0x2e0   : > { %v818_v25 = vsub.f32 %v814_v24, %v816_v23  ;;  %v955_v23 = vsub.s32 5, %v1713_v36 }
 0x2e2   : > { %v822_v27 = vadd.f32 1e-05, %v818_v25  ;;  %v956_v24 = vrot.slane %v1721_v39, %v955_v23 }
 0x2e4   : > { %1436 = vrsqrt.f32 %v822_v27 }
 0x2eb   : > { %v805_v26 = vpop.xlane.xlu1 %804 }
 0x2ec   : > { %v807_v28 = vmul.f32 0.03125, %v805_v26 }
 0x2ee   : > { %v817_v30 = vmul.f32 %v807_v28, %v807_v28  ;;  %v821_v44 = vsub.f32 %v801_v9, %v807_v28 }
 0x2ef   : > { %v813_v29 = vpop.xlane.xlu1 %812 }
 0x2f0   : > { %v815_v31 = vmul.f32 0.03125, %v813_v29 }
 0x2f1   : > { %v1437_v38 = vpop.eup %1436 }
 0x2f2   : > { %v819_v32 = vsub.f32 %v815_v31, %v817_v30  ;;  %v826_v41 = vmul.f32 %v1437_v38, %v820_v40 }
 0x2f4   : > { %v823_v34 = vadd.f32 1e-05, %v819_v32  ;;  %v832_v47 = vmul.f32 %v831_v42, %v826_v41 }
 0x2f6   : > { %1438 = vrsqrt.f32 %v823_v34  ;;  %v1728_v50 = vadd.f32 %v837_v48, %v832_v47 }
 0x303   : > { %v1439_v45 = vpop.eup %1438 }
 0x304   : > { %v827_v46 = vmul.f32 %v1439_v45, %v821_v44 }
 0x306   : > { %v833_v49 = vmul.f32 %v831_v42, %v827_v46 }
 0x308   : > { %v1730_v51 = vadd.f32 %v837_v48, %v833_v49 }
 0x30a   : > { %v840_v52 = vpack.c.bf16 %v1730_v51, %v1728_v50 }
 0x30c   : > { %1333 = vmatmul.mubr.bf16.vlgmr.msra.gmra.mxu1 %v840_v52 }
 0x3cc   : > { %v927_v63 = vpop.f32.mrf.mxu1 }
 0x3cd   : > { %v928_v0 = vadd.f32 %v927_v63, %v844_v62 }
 0x3ce   : > { %v1334_v1 = vpop.f32.mrf.mxu1 }
 0x3cf   : > { %v936_v2 = vmul.f32 0.044715, %v928_v0  ;;  %v934_v17 = vmul.f32 0.5, %v928_v0 }
 0x3d0   : > { %v930_v3 = vpop.f32.mrf.mxu1 }
 0x3d1   : > { %v938_v4 = vmul.f32 %v936_v2, %v928_v0  ;;  %v931_v5 = vadd.f32 %v930_v3, %v844_v62 }
 0x3d2   : > { %v1335_v6 = vpop.f32.mrf.mxu1 }
 0x3d3   : > { %v940_v7 = vmul.f32 %v938_v4, %v928_v0  ;;  %v937_v8 = vmul.f32 0.044715, %v931_v5  ;;  %v935_v18 = vmul.f32 0.5, %v931_v5 }
 0x3d5   : > { %v942_v9 = vadd.f32 %v940_v7, %v928_v0  ;;  %v939_v10 = vmul.f32 %v937_v8, %v931_v5 }
 0x3d7   : > { %v944_v11 = vmul.f32 0.7978846, %v942_v9  ;;  %v941_v12 = vmul.f32 %v939_v10, %v931_v5 }
 0x3d9   : > { %1440 = vtanh.f32 %v944_v11  ;;  %v943_v33 = vadd.f32 %v941_v12, %v931_v5 }
 0x3db   : > { %v945_v13 = vmul.f32 0.7978846, %v943_v33 }
 0x3dd   : > { %1442 = vtanh.f32 %v945_v13 }
 0x3e6   : > { %v1441_v14 = vpop.eup %1440 }
 0x3e7   : > { %v948_v15 = vadd.f32 1.0, %v1441_v14 }
 0x3e9   : > { %v950_v20 = vmul.f32 %v948_v15, %v934_v17 }
 0x3ea   : > { %v1443_v16 = vpop.eup %1442 }
 0x3eb   : > { %v949_v19 = vadd.f32 1.0, %v1443_v16 }
 0x3ed   : > { %v951_v21 = vmul.f32 %v949_v19, %v935_v18 }
 0x3ef   : > { %v952_v22 = vpack.c.bf16 %v951_v21, %v950_v20 }
 0x3f1   : > { %1353 = vmatmul.mubr.bf16.vlgmr.msra.gmra.mxu0 %v952_v22 }
 0x4b1   : > { %v1039_v25 = vpop.f32.mrf.mxu0 }
 0x4b2   : > { %v1040_v26 = vadd.f32 %v1039_v25, %v956_v24 }
 0x4b3   : > { %v1354_v27 = vpop.f32.mrf.mxu0 }
 0x4b4   : > { %v1046_v28 = vadd.f32 %v1040_v26, %v1728_v50 }
 0x4b5   : > { %v1042_v29 = vpop.f32.mrf.mxu0 }
 0x4b6   : > { %1048 = vadd.xlane.f32.xlu1 %v1046_v28  ;;  %v1043_v31 = vadd.f32 %v1042_v29, %v956_v24  ;;  %v1054_v32 = vmul.f32 %v1046_v28, %v1046_v28 }
 0x4b7   : > { %v1355_v30 = vpop.f32.mrf.mxu0 }
 0x4b8   : > { %v1047_v34 = vadd.f32 %v1043_v31, %v1730_v51  ;;  %v1076_v51 = vsub.s32 2, %v1713_v36 }
 0x4ba   : > { %1056 = vadd.xlane.f32.xlu1 %v1054_v32  ;;  %v1055_v35 = vmul.f32 %v1047_v34, %v1047_v34  ;;  %v1077_v56 = vrot.slane %v1721_v39, %v1076_v51 }
 0x4be   : > { %1050 = vadd.xlane.f32.xlu1 %v1047_v34 }
 0x4c2   : > { %1058 = vadd.xlane.f32.xlu1 %v1055_v35 }
 0x53f   : > { %v1049_v38 = vpop.xlane.xlu1 %1048 }
 0x540   : > { %v1052_v40 = vmul.f32 0.03125, %v1049_v38 }
 0x542   : > { %v1062_v42 = vmul.f32 %v1052_v40, %v1052_v40  ;;  %v1066_v55 = vsub.f32 %v1046_v28, %v1052_v40 }
 0x543   : > { %v1057_v41 = vpop.xlane.xlu1 %1056 }
 0x544   : > { %v1060_v43 = vmul.f32 0.03125, %v1057_v41 }
 0x546   : > { %v1064_v44 = vsub.f32 %v1060_v43, %v1062_v42 }
 0x547   : > { %v1051_v45 = vpop.xlane.xlu1 %1050 }
 0x548   : > { %v1068_v46 = vadd.f32 1e-05, %v1064_v44  ;;  %v1053_v47 = vmul.f32 0.03125, %v1051_v45 }
 0x54a   : > { %1444 = vrsqrt.f32 %v1068_v46  ;;  %v1063_v49 = vmul.f32 %v1053_v47, %v1053_v47  ;;  %v1067_v62 = vsub.f32 %v1047_v34, %v1053_v47 }
 0x54b   : > { %v1059_v48 = vpop.xlane.xlu1 %1058 }
 0x54c   : > { %v1061_v50 = vmul.f32 0.03125, %v1059_v48 }
 0x54e   : > { %v1065_v52 = vsub.f32 %v1061_v50, %v1063_v49 }
 0x550   : > { %v1069_v53 = vadd.f32 1e-05, %v1065_v52 }
 0x552   : > { %1446 = vrsqrt.f32 %v1069_v53 }
 0x557   : > { %v1445_v57 = vpop.eup %1444 }
 0x558   : > { %v1072_v59 = vmul.f32 %v1445_v57, %v1066_v55 }
 0x55a   : > { %v1078_v60 = vmul.f32 %v1077_v56, %v1072_v59 }
 0x55c   : > { %v1084_v61 = vadd.f32 %v1083_v58, %v1078_v60 }
 0x55f   : > { %v1447_v63 = vpop.eup %1446 }
 0x560   : > { %v1073_v0 = vmul.f32 %v1447_v63, %v1067_v62  ;;  %1089 = sbr.rel (%p1258_p5) target bundleno = 1383 (0x567), region = 68 }
 0x562   : > { %v1079_v1 = vmul.f32 %v1077_v56, %v1073_v0 }
 0x564   : > { %v1085_v2 = vadd.f32 %v1083_v58, %v1079_v1 }
 0x565   : > { %1090 = vst [vmem:[#allocation2] sm:$0xff] %v1084_v61 }
 0x566   : > { %1091 = vst [vmem:[#allocation2 + $0x8] sm:$0xff] %v1085_v2 }
 0x567 PF: > { %p1259_p6 = scmp.ne.s32.totalorder %s1491_s15, 1 }
 0x569   : > { %1095 = sbr.rel (%p1259_p6) target bundleno = 1526 (0x5f6), region = 72 }
 0x56e   : > { %v1096_v36 = vld [vmem:[#allocation3] sm:$0x1]  ;;  %v1505_v3 = vmov 0   ;;  %v1097_v7 = vld [vmem:[%s1792_s0] sm:$0xff]  ;;  %v1098_v8 = vld [vmem:[%s1792_s0 + $0x8] sm:$0xff] }
 0x56f   : > { %1448 = vset.pattern.permute.xlu0 %v1505_v3  ;;  %v1103_v39 = vrot.slane %v1096_v36, %v1719_v37  ;;  %v1110_v4 = vsub.f32 1.0, %v1096_v36 }
 0x571   : > { %1105 = vperm.xlu0 %1448, %v1103_v39   ;;  %v1115_v5 = vrot.slane %v1110_v4, %v1719_v37 }
 0x575   : > { %1117 = vperm.xlu0 %1448, %v1115_v5  }
 0x5ec   : > { %v1106_v6 = vpop.permute.xlu0 %1105 }
 0x5ed   : > { %v1108_v10 = vmul.f32 %v1106_v6, %v1097_v7  ;;  %v1109_v11 = vmul.f32 %v1106_v6, %v1098_v8 }
 0x5f0   : > { %v1118_v9 = vpop.permute.xlu0 %1117 }
 0x5f1   : > { %v1120_v12 = vmul.f32 %v1118_v9, %v1084_v61  ;;  %v1121_v33 = vmul.f32 %v1118_v9, %v1085_v2 }
 0x5f3   : > { %v1122_v13 = vadd.f32 %v1120_v12, %v1108_v10  ;;  %v1123_v14 = vadd.f32 %v1121_v33, %v1109_v11 }
 0x5f5   : > { %1124 = vst [vmem:[#allocation4] sm:$0xff] %v1122_v13  ;;  %1125 = vst [vmem:[#allocation4 + $0x8] sm:$0xff] %v1123_v14 }
 0x5f6 PF: > { %p1768_p7 = scmp.eq.s32.totalorder %s1212_s9, 1  ;;  %s1506_s20 = smov [#allocation4]  }
 0x5f7   : > { %s1135_s21 = sshll.u32 %s1506_s20, 4  ;;  %s1136_s21 = int_to_ptr.vmem [resolvable:$true] %s1135_s21 }
 0x5f8   : > { %s1449_s22 = scalar_lea.vmem %s1136_s21, 256  ;;  %p1456_p11 = scmp.lt.s32.totalorder %s1136_s21, %s1136_s21 }
 0x5f9   : > { %p1450_p8 = scmp.ne.s32.totalorder %s1136_s21, %s1449_s22  ;;  %p1457_p12 = scmp.lt.s32.totalorder %s1449_s22, %s1449_s22 }
 0x5fb   : > { %p1451_p9 = pnand %p1450_p8, %p1768_p7  ;;  %p1458_p13 = por %p1457_p12, %p1456_p11 }
 0x5fd   : > { %p1452_p10 = pneg %p1451_p9 }
 0x5ff   : > { %p1459_p0 = pnand %p1458_p13, %p1452_p10 }
 0x601   : > { %1462 = shalt.err (!%p1459_p0)
}
 0x602   : > { %s1507_s23 = smov 128   ;;  %s1508_s9 = smov 8  }
 0x603   : > { %1357 = dma.vmem_to_hbm [thread:$0]  (%p1768_p7), %s1136_s21, 256, %s1802_s10, [#allocation5], %s1507_s23, %s1507_s23, %s1508_s9  }
 0x604   : > { %1486 = dma.done.wait (%p1768_p7), [#allocation5], 256  }
 0x605   : > { %1488 = vsyncadd (%p1768_p7), [#allocation5], 4294967040 }
 0x606 PF: > { %s23_s17 = sadd.s32 1, %s1499_s17   ;;  %s1804_s15 = smov %s1495_s16 }
 0x607   : > { %p20_p1 = scmp.ge.s32.totalorder %s23_s17, 4   ;;  %s1805_s16 = smov %s1807_s18 }
 0x609   :  { %22 = sbr.rel (!%p20_p1) target bundleno = 5 (0x5), region = 106 }
 0x60e   :  { %1151 = vsyncpa [#allocation5], 1 }
 0x60f   :  { %1153 = vsyncpa [#allocation5 + $0x1], 1 }

</bundles_post_ra>
